<compile_context>
chip_gen: v6e
topology: v6e:2x2x1
jax: 0.10.0
libtpu: 0.0.40
codegen_flags: <defaults>
</compile_context>

<pallas_src>
import functools
import math

import jax
import jax.numpy as jnp
from jax import lax
from jax.experimental import pallas as pl
from jax.experimental.pallas import tpu as pltpu

LEAKY_SLOPE = 0.01  # torch.nn.LeakyReLU default negative_slope


# ----------------------------- Pallas kernel ------------------------------ #

def _leaky(x):
    return jnp.where(x >= 0, x, LEAKY_SLOPE * x)


def fused_tcn_kernel(x_ref, *rest, dilations, kernel_size, channels, mm_dtype):
    """All CausalConvolutionBlocks fused into one kernel invocation.

    rest = per layer: [w1_tap_0..w1_tap_{K-1}, b1,
                       w2_tap_0..w2_tap_{K-1}, b2, wr, br]   (VMEM residents)
           + [o_ref]                                          (output block)
    """
    n_layers = len(dilations)
    per_layer = 2 * kernel_size + 4
    w_refs = rest[:per_layer * n_layers]
    o_ref = rest[per_layer * n_layers]

    b_tile, seq, _ = x_ref.shape

    def mm(lhs2d, w_ref):
        # single MXU call; f32 accumulation regardless of mm_dtype.
        return jnp.dot(lhs2d.astype(mm_dtype), w_ref[...],
                       preferred_element_type=jnp.float32)

    def causal_conv(h, w_tap_refs, b_row, dil, c_in, c_out):
        # h: (b_tile, seq, c_in) f32.  One accumulated matmul per tap; the
        # dilated causal shift is a sublane roll (XLU) + iota mask (VPU), so
        # rows never leak across batch elements or from the sequence future.
        t_idx = lax.broadcasted_iota(jnp.int32, (b_tile, seq, c_in), 1)
        acc = None
        for j in range(kernel_size):
            shift = (kernel_size - 1 - j) * dil
            if shift >= seq:
                continue  # tap lies entirely in the zero-padding region
            if shift == 0:
                tap = h
            else:
                rolled = pltpu.roll(h, shift=shift, axis=1)
                tap = jnp.where(t_idx >= shift, rolled, 0.0)
            y = mm(tap.reshape(b_tile * seq, c_in), w_tap_refs[j])
            acc = y if acc is None else acc + y
        acc = acc + b_row                       # (b_tile*seq, c_out) + (1, c_out)
        return acc.reshape(b_tile, seq, c_out)

    h = x_ref[...].astype(jnp.float32)
    off = 0
    for i, dil in enumerate(dilations):
        c_in, c_out = channels[i], channels[i + 1]
        w1_taps = w_refs[off:off + kernel_size]; off += kernel_size
        b1 = w_refs[off][...];                   off += 1
        w2_taps = w_refs[off:off + kernel_size]; off += kernel_size
        b2 = w_refs[off][...];                   off += 1
        wr = w_refs[off];                        off += 1
        br = w_refs[off][...];                   off += 1

        z = _leaky(causal_conv(h, w1_taps, b1, dil, c_in, c_out))
        z = _leaky(causal_conv(z, w2_taps, b2, dil, c_out, c_out))
        res = (mm(h.reshape(b_tile * seq, c_in), wr) + br).reshape(b_tile, seq, c_out)
        h = _leaky(z + res)

    # NOTE: channels[-1] (<128) lanes -> masked vst; only worth padding the
    # output to 128 lanes if the final store ever shows up as the bottleneck.
    o_ref[...] = h.astype(o_ref.dtype)


def contrastive_tcn_forward(inputs, params, kernel_size, *, b_tile=None,
                            mm_dtype=jnp.bfloat16):
    """inputs: (B, L, input_size) -> (B, L, num_channels[-1]).

    Matches ContrastiveTCN.forward: permute -> CausalCNN -> SqueezeChannels
    (no-op for L > 1) -> permute back.  We stay in (B, L, C) layout and run
    the whole stack of blocks in one pallas_call.
    """
    x = inputs.astype(jnp.float32)
    B, L, c0 = x.shape
    n_layers = len(params)
    dilations = tuple(2 ** i for i in range(n_layers))
    channels = (c0,) + tuple(int(p["w1"].shape[-1]) for p in params)
    c_last = channels[-1]

    if b_tile is None:
        # Fill the MXU M dimension: target b_tile*L ~ 512 rows per matmul.
        b_tile = max(1, min(B, pl.cdiv(512, L)))
        # Prefer >=2 grid steps (v7x: two TensorCores share the "parallel"
        # axis) when each half-tile still keeps the MXU reasonably fed.
        if b_tile >= B and B > 1 and pl.cdiv(B, 2) * L >= 256:
            b_tile = pl.cdiv(B, 2)
    b_tile = min(b_tile, B)
    grid = (pl.cdiv(B, b_tile),)

    # TODO(synk): for long sequences, additionally tile L with a
    # (K-1)*max(dilations) halo so one block fits v7x's 64 MiB VMEM.

    w_dtype = jnp.dtype(mm_dtype)
    weight_inputs = []
    for p in params:
        for j in range(kernel_size):
            weight_inputs.append(p["w1"][j].astype(w_dtype))   # (c_in, c_out)
        weight_inputs.append(p["b1"])                            # (1, c_out) f32
        for j in range(kernel_size):
            weight_inputs.append(p["w2"][j].astype(w_dtype))   # (c_out, c_out)
        weight_inputs.append(p["b2"])
        weight_inputs.append(p["wr"].astype(w_dtype))            # (c_in, c_out)
        weight_inputs.append(p["br"])
    # Whole-array VMEM residents: no per-step blocking / double-buffering.
    weight_specs = [pl.BlockSpec(memory_space=pltpu.MemorySpace.VMEM)] * len(weight_inputs)

    # VMEM budget: double-buffered I/O blocks + resident weights + headroom
    # for live activations; capped at 64 MiB so the sizing is v7x-safe.
    weight_bytes = sum(int(w.size) * w.dtype.itemsize for w in weight_inputs)
    io_bytes = 2 * b_tile * L * (c0 + c_last) * 4
    act_bytes = 6 * b_tile * L * max(channels) * 4
    vmem_limit = int(min(64 << 20, max(32 << 20,
                                       2 * (weight_bytes + io_bytes + act_bytes))))

    kern = functools.partial(
        fused_tcn_kernel, dilations=dilations, kernel_size=kernel_size,
        channels=channels, mm_dtype=mm_dtype)

    return pl.pallas_call(
        kern,
        out_shape=jax.ShapeDtypeStruct((B, L, c_last), jnp.float32),
        grid=grid,
        in_specs=[pl.BlockSpec((b_tile, L, c0), lambda b: (b, 0, 0))] + weight_specs,
        out_specs=pl.BlockSpec((b_tile, L, c_last), lambda b: (b, 0, 0)),
        compiler_params=pltpu.CompilerParams(
            dimension_semantics=("parallel",),
            vmem_limit_bytes=vmem_limit),
    )(x, *weight_inputs)


# --------------------------- parameters (init) ----------------------------- #

def init_params(key, input_size, num_channels, kernel_size):
    """Deterministic Conv1d-style uniform init for every block.

    Weights are stored as (K, C_in, C_out); the wrapper splits them into
    per-tap (C_in, C_out) matrices the kernel consumes.
    """
    params = []
    for i, c_out in enumerate(num_channels):
        c_in = input_size if i == 0 else num_channels[i - 1]
        key, k1, k2, k3, k4, k5, k6 = jax.random.split(key, 7)
        bnd1 = 1.0 / math.sqrt(c_in * kernel_size)
        bnd2 = 1.0 / math.sqrt(c_out * kernel_size)
        bndr = 1.0 / math.sqrt(c_in * 1)
        params.append(dict(
            w1=jax.random.uniform(k1, (kernel_size, c_in, c_out), jnp.float32, -bnd1, bnd1),
            b1=jax.random.uniform(k2, (1, c_out), jnp.float32, -bnd1, bnd1),
            w2=jax.random.uniform(k3, (kernel_size, c_out, c_out), jnp.float32, -bnd2, bnd2),
            b2=jax.random.uniform(k4, (1, c_out), jnp.float32, -bnd2, bnd2),
            wr=jax.random.uniform(k5, (c_in, c_out), jnp.float32, -bndr, bndr),
            br=jax.random.uniform(k6, (1, c_out), jnp.float32, -bndr, bndr),
        ))
    return params


# ------------------------------ pure-JAX ref ------------------------------- #

_HI = jax.lax.Precision.HIGHEST  # keep the reference at full f32 precision


def _ref_causal_conv(x, w, b, dilation):
    B, L, _ = x.shape
    K, _, c_out = w.shape
    y = jnp.zeros((B, L, c_out), jnp.float32) + b  # b: (1, c_out) broadcasts
    for j in range(K):
        shift = (K - 1 - j) * dilation
        if shift >= L:
            continue
        xs = jnp.pad(x, ((0, 0), (shift, 0), (0, 0)))[:, :L, :]
        y = y + jnp.einsum("blc,co->blo", xs, w[j], precision=_HI)
    return y


def _ref_forward(inputs, params, kernel_size):
    def leaky(v):
        return jnp.where(v >= 0, v, LEAKY_SLOPE * v)

    x = inputs.astype(jnp.float32)
    for i, p in enumerate(params):
        d = 2 ** i
        h1 = leaky(_ref_causal_conv(x, p["w1"], p["b1"], d))
        h2 = leaky(_ref_causal_conv(h1, p["w2"], p["b2"], d))
        res = jnp.einsum("blc,co->blo", x, p["wr"], precision=_HI) + p["br"]
        x = leaky(h2 + res)
    return x


# ----------------------------------- main ---------------------------------- #

if __name__ == "__main__":
    B, L, input_size = 2, 16, 4
    num_channels = [32, 32, 16]
    kernel_size = 2

    key = jax.random.PRNGKey(0)
    key, kin = jax.random.split(key)
    inputs = jax.random.normal(kin, (B, L, input_size), jnp.float32)
    params = init_params(key, input_size, num_channels, kernel_size)

    ref = _ref_forward(inputs, params, kernel_size)

    # exact path (f32 MXU inputs) -> tight tolerance against the f32 reference
    out_f32 = jax.block_until_ready(
        contrastive_tcn_forward(inputs, params, kernel_size, mm_dtype=jnp.float32))
    assert out_f32.shape == (B, L, num_channels[-1]), out_f32.shape
    assert jnp.allclose(out_f32, ref, atol=1e-3, rtol=1e-3), \
        float(jnp.max(jnp.abs(out_f32 - ref)))

    # default fast path (bf16 MXU inputs, f32 accumulation) -> looser tolerance
    out_bf16 = jax.block_until_ready(
        contrastive_tcn_forward(inputs, params, kernel_size))
    assert out_bf16.shape == (B, L, num_channels[-1]), out_bf16.shape
    assert jnp.allclose(out_bf16, ref, atol=5e-2, rtol=5e-2), \
        float(jnp.max(jnp.abs(out_bf16 - ref)))

    print("KERNEL_OK")
</pallas_src>

<mosaic_0001>
module attributes {stable_mosaic.version = 11 : i64} {
  func.func @fused_tcn_kernel(%arg0: i32, %arg1: memref<2x16x4xf32, #tpu.memory_space<vmem>>, %arg2: memref<4x32xf32, #tpu.memory_space<vmem>>, %arg3: memref<4x32xf32, #tpu.memory_space<vmem>>, %arg4: memref<1x32xf32, #tpu.memory_space<vmem>>, %arg5: memref<32x32xf32, #tpu.memory_space<vmem>>, %arg6: memref<32x32xf32, #tpu.memory_space<vmem>>, %arg7: memref<1x32xf32, #tpu.memory_space<vmem>>, %arg8: memref<4x32xf32, #tpu.memory_space<vmem>>, %arg9: memref<1x32xf32, #tpu.memory_space<vmem>>, %arg10: memref<32x32xf32, #tpu.memory_space<vmem>>, %arg11: memref<32x32xf32, #tpu.memory_space<vmem>>, %arg12: memref<1x32xf32, #tpu.memory_space<vmem>>, %arg13: memref<32x32xf32, #tpu.memory_space<vmem>>, %arg14: memref<32x32xf32, #tpu.memory_space<vmem>>, %arg15: memref<1x32xf32, #tpu.memory_space<vmem>>, %arg16: memref<32x32xf32, #tpu.memory_space<vmem>>, %arg17: memref<1x32xf32, #tpu.memory_space<vmem>>, %arg18: memref<32x16xf32, #tpu.memory_space<vmem>>, %arg19: memref<32x16xf32, #tpu.memory_space<vmem>>, %arg20: memref<1x16xf32, #tpu.memory_space<vmem>>, %arg21: memref<16x16xf32, #tpu.memory_space<vmem>>, %arg22: memref<16x16xf32, #tpu.memory_space<vmem>>, %arg23: memref<1x16xf32, #tpu.memory_space<vmem>>, %arg24: memref<32x16xf32, #tpu.memory_space<vmem>>, %arg25: memref<1x16xf32, #tpu.memory_space<vmem>>, %arg26: memref<2x16x16xf32, #tpu.memory_space<vmem>>) attributes {dimension_semantics = [#tpu.dimension_semantics<parallel>], iteration_bounds = array<i64: 1>, scalar_prefetch = 0 : i64, scratch_operands = 0 : i64, tpu.core_type = #tpu.core_type<tc>, window_params = [{transform_indices = @transform_0, window_bounds = array<i64: 2, 16, 4>}, {pipeline_mode = #tpu.pipeline_mode<synchronous>, transform_indices = @transform_1, window_bounds = array<i64: 4, 32>}, {pipeline_mode = #tpu.pipeline_mode<synchronous>, transform_indices = @transform_2, window_bounds = array<i64: 4, 32>}, {pipeline_mode = #tpu.pipeline_mode<synchronous>, transform_indices = @transform_3, window_bounds = array<i64: 1, 32>}, {pipeline_mode = #tpu.pipeline_mode<synchronous>, transform_indices = @transform_4, window_bounds = array<i64: 32, 32>}, {pipeline_mode = #tpu.pipeline_mode<synchronous>, transform_indices = @transform_5, window_bounds = array<i64: 32, 32>}, {pipeline_mode = #tpu.pipeline_mode<synchronous>, transform_indices = @transform_6, window_bounds = array<i64: 1, 32>}, {pipeline_mode = #tpu.pipeline_mode<synchronous>, transform_indices = @transform_7, window_bounds = array<i64: 4, 32>}, {pipeline_mode = #tpu.pipeline_mode<synchronous>, transform_indices = @transform_8, window_bounds = array<i64: 1, 32>}, {pipeline_mode = #tpu.pipeline_mode<synchronous>, transform_indices = @transform_9, window_bounds = array<i64: 32, 32>}, {pipeline_mode = #tpu.pipeline_mode<synchronous>, transform_indices = @transform_10, window_bounds = array<i64: 32, 32>}, {pipeline_mode = #tpu.pipeline_mode<synchronous>, transform_indices = @transform_11, window_bounds = array<i64: 1, 32>}, {pipeline_mode = #tpu.pipeline_mode<synchronous>, transform_indices = @transform_12, window_bounds = array<i64: 32, 32>}, {pipeline_mode = #tpu.pipeline_mode<synchronous>, transform_indices = @transform_13, window_bounds = array<i64: 32, 32>}, {pipeline_mode = #tpu.pipeline_mode<synchronous>, transform_indices = @transform_14, window_bounds = array<i64: 1, 32>}, {pipeline_mode = #tpu.pipeline_mode<synchronous>, transform_indices = @transform_15, window_bounds = array<i64: 32, 32>}, {pipeline_mode = #tpu.pipeline_mode<synchronous>, transform_indices = @transform_16, window_bounds = array<i64: 1, 32>}, {pipeline_mode = #tpu.pipeline_mode<synchronous>, transform_indices = @transform_17, window_bounds = array<i64: 32, 16>}, {pipeline_mode = #tpu.pipeline_mode<synchronous>, transform_indices = @transform_18, window_bounds = array<i64: 32, 16>}, {pipeline_mode = #tpu.pipeline_mode<synchronous>, transform_indices = @transform_19, window_bounds = array<i64: 1, 16>}, {pipeline_mode = #tpu.pipeline_mode<synchronous>, transform_indices = @transform_20, window_bounds = array<i64: 16, 16>}, {pipeline_mode = #tpu.pipeline_mode<synchronous>, transform_indices = @transform_21, window_bounds = array<i64: 16, 16>}, {pipeline_mode = #tpu.pipeline_mode<synchronous>, transform_indices = @transform_22, window_bounds = array<i64: 1, 16>}, {pipeline_mode = #tpu.pipeline_mode<synchronous>, transform_indices = @transform_23, window_bounds = array<i64: 32, 16>}, {pipeline_mode = #tpu.pipeline_mode<synchronous>, transform_indices = @transform_24, window_bounds = array<i64: 1, 16>}, {transform_indices = @transform_25, window_bounds = array<i64: 2, 16, 16>}]} {
    %c0 = arith.constant 0 : index
    %c0_0 = arith.constant 0 : index
    %c0_1 = arith.constant 0 : index
    %0 = vector.load %arg1[%c0, %c0_0, %c0_1] : memref<2x16x4xf32, #tpu.memory_space<vmem>>, vector<2x16x4xf32>
    %c0_2 = arith.constant 0 : index
    %c0_3 = arith.constant 0 : index
    %1 = vector.load %arg4[%c0_2, %c0_3] : memref<1x32xf32, #tpu.memory_space<vmem>>, vector<1x32xf32>
    %c0_4 = arith.constant 0 : index
    %c0_5 = arith.constant 0 : index
    %2 = vector.load %arg7[%c0_4, %c0_5] : memref<1x32xf32, #tpu.memory_space<vmem>>, vector<1x32xf32>
    %c0_6 = arith.constant 0 : index
    %c0_7 = arith.constant 0 : index
    %3 = vector.load %arg9[%c0_6, %c0_7] : memref<1x32xf32, #tpu.memory_space<vmem>>, vector<1x32xf32>
    %4 = tpu.iota {dimensions = array<i32: 1>} : vector<2x16x4xi32>
    %c1_i32 = arith.constant 1 : i32
    %5 = tpu.dynamic_rotate %0 by %c1_i32 dim 1 : vector<2x16x4xf32>, i32 -> vector<2x16x4xf32>
    %c1_i32_8 = arith.constant 1 : i32
    %6 = vector.broadcast %c1_i32_8 : i32 to vector<2x16x4xi32>
    %7 = arith.cmpi sge, %4, %6 : vector<2x16x4xi32>
    %cst = arith.constant 0.000000e+00 : f32
    %8 = vector.broadcast %cst : f32 to vector<2x16x4xf32>
    %9 = arith.select %7, %5, %8 : vector<2x16x4xi1>, vector<2x16x4xf32>
    %10 = vector.shape_cast %9 : vector<2x16x4xf32> to vector<32x4xf32>
    %c0_9 = arith.constant 0 : index
    %c0_10 = arith.constant 0 : index
    %11 = vector.load %arg2[%c0_9, %c0_10] : memref<4x32xf32, #tpu.memory_space<vmem>>, vector<4x32xf32>
    %cst_11 = arith.constant dense<0.000000e+00> : vector<32x32xf32>
    %12 = tpu.matmul %10, %11, %cst_11 {dimension_numbers = #tpu.dot_dimension_numbers<[1], [0], [0], [1], [0, 0, 1, 1], [], []>} : vector<32x4xf32>, vector<4x32xf32>, vector<32x32xf32> -> vector<32x32xf32>
    %13 = vector.shape_cast %0 : vector<2x16x4xf32> to vector<32x4xf32>
    %c0_12 = arith.constant 0 : index
    %c0_13 = arith.constant 0 : index
    %14 = vector.load %arg3[%c0_12, %c0_13] : memref<4x32xf32, #tpu.memory_space<vmem>>, vector<4x32xf32>
    %cst_14 = arith.constant dense<0.000000e+00> : vector<32x32xf32>
    %15 = tpu.matmul %13, %14, %cst_14 {dimension_numbers = #tpu.dot_dimension_numbers<[1], [0], [0], [1], [0, 0, 1, 1], [], []>} : vector<32x4xf32>, vector<4x32xf32>, vector<32x32xf32> -> vector<32x32xf32>
    %16 = arith.addf %12, %15 : vector<32x32xf32>
    %17 = vector.broadcast %1 : vector<1x32xf32> to vector<32x32xf32>
    %18 = arith.addf %16, %17 : vector<32x32xf32>
    %19 = vector.shape_cast %18 : vector<32x32xf32> to vector<2x16x32xf32>
    %cst_15 = arith.constant 0.000000e+00 : f32
    %20 = vector.broadcast %cst_15 : f32 to vector<2x16x32xf32>
    %21 = arith.cmpf oge, %19, %20 : vector<2x16x32xf32>
    %cst_16 = arith.constant 0.00999999977 : f32
    %22 = vector.broadcast %cst_16 : f32 to vector<2x16x32xf32>
    %23 = arith.mulf %22, %19 : vector<2x16x32xf32>
    %24 = arith.select %21, %19, %23 : vector<2x16x32xi1>, vector<2x16x32xf32>
    %25 = tpu.iota {dimensions = array<i32: 1>} : vector<2x16x32xi32>
    %c1_i32_17 = arith.constant 1 : i32
    %26 = tpu.dynamic_rotate %24 by %c1_i32_17 dim 1 : vector<2x16x32xf32>, i32 -> vector<2x16x32xf32>
    %c1_i32_18 = arith.constant 1 : i32
    %27 = vector.broadcast %c1_i32_18 : i32 to vector<2x16x32xi32>
    %28 = arith.cmpi sge, %25, %27 : vector<2x16x32xi32>
    %cst_19 = arith.constant 0.000000e+00 : f32
    %29 = vector.broadcast %cst_19 : f32 to vector<2x16x32xf32>
    %30 = arith.select %28, %26, %29 : vector<2x16x32xi1>, vector<2x16x32xf32>
    %31 = vector.shape_cast %30 : vector<2x16x32xf32> to vector<32x32xf32>
    %c0_20 = arith.constant 0 : index
    %c0_21 = arith.constant 0 : index
    %32 = vector.load %arg5[%c0_20, %c0_21] : memref<32x32xf32, #tpu.memory_space<vmem>>, vector<32x32xf32>
    %cst_22 = arith.constant dense<0.000000e+00> : vector<32x32xf32>
    %33 = tpu.matmul %31, %32, %cst_22 {dimension_numbers = #tpu.dot_dimension_numbers<[1], [0], [0], [1], [0, 0, 1, 1], [], []>} : vector<32x32xf32>, vector<32x32xf32>, vector<32x32xf32> -> vector<32x32xf32>
    %34 = vector.shape_cast %24 : vector<2x16x32xf32> to vector<32x32xf32>
    %c0_23 = arith.constant 0 : index
    %c0_24 = arith.constant 0 : index
    %35 = vector.load %arg6[%c0_23, %c0_24] : memref<32x32xf32, #tpu.memory_space<vmem>>, vector<32x32xf32>
    %cst_25 = arith.constant dense<0.000000e+00> : vector<32x32xf32>
    %36 = tpu.matmul %34, %35, %cst_25 {dimension_numbers = #tpu.dot_dimension_numbers<[1], [0], [0], [1], [0, 0, 1, 1], [], []>} : vector<32x32xf32>, vector<32x32xf32>, vector<32x32xf32> -> vector<32x32xf32>
    %37 = arith.addf %33, %36 : vector<32x32xf32>
    %38 = vector.broadcast %2 : vector<1x32xf32> to vector<32x32xf32>
    %39 = arith.addf %37, %38 : vector<32x32xf32>
    %40 = vector.shape_cast %39 : vector<32x32xf32> to vector<2x16x32xf32>
    %cst_26 = arith.constant 0.000000e+00 : f32
    %41 = vector.broadcast %cst_26 : f32 to vector<2x16x32xf32>
    %42 = arith.cmpf oge, %40, %41 : vector<2x16x32xf32>
    %cst_27 = arith.constant 0.00999999977 : f32
    %43 = vector.broadcast %cst_27 : f32 to vector<2x16x32xf32>
    %44 = arith.mulf %43, %40 : vector<2x16x32xf32>
    %45 = arith.select %42, %40, %44 : vector<2x16x32xi1>, vector<2x16x32xf32>
    %46 = vector.shape_cast %0 : vector<2x16x4xf32> to vector<32x4xf32>
    %c0_28 = arith.constant 0 : index
    %c0_29 = arith.constant 0 : index
    %47 = vector.load %arg8[%c0_28, %c0_29] : memref<4x32xf32, #tpu.memory_space<vmem>>, vector<4x32xf32>
    %cst_30 = arith.constant dense<0.000000e+00> : vector<32x32xf32>
    %48 = tpu.matmul %46, %47, %cst_30 {dimension_numbers = #tpu.dot_dimension_numbers<[1], [0], [0], [1], [0, 0, 1, 1], [], []>} : vector<32x4xf32>, vector<4x32xf32>, vector<32x32xf32> -> vector<32x32xf32>
    %49 = vector.broadcast %3 : vector<1x32xf32> to vector<32x32xf32>
    %50 = arith.addf %48, %49 : vector<32x32xf32>
    %51 = vector.shape_cast %50 : vector<32x32xf32> to vector<2x16x32xf32>
    %52 = arith.addf %45, %51 : vector<2x16x32xf32>
    %cst_31 = arith.constant 0.000000e+00 : f32
    %53 = vector.broadcast %cst_31 : f32 to vector<2x16x32xf32>
    %54 = arith.cmpf oge, %52, %53 : vector<2x16x32xf32>
    %cst_32 = arith.constant 0.00999999977 : f32
    %55 = vector.broadcast %cst_32 : f32 to vector<2x16x32xf32>
    %56 = arith.mulf %55, %52 : vector<2x16x32xf32>
    %57 = arith.select %54, %52, %56 : vector<2x16x32xi1>, vector<2x16x32xf32>
    %c0_33 = arith.constant 0 : index
    %c0_34 = arith.constant 0 : index
    %58 = vector.load %arg12[%c0_33, %c0_34] : memref<1x32xf32, #tpu.memory_space<vmem>>, vector<1x32xf32>
    %c0_35 = arith.constant 0 : index
    %c0_36 = arith.constant 0 : index
    %59 = vector.load %arg15[%c0_35, %c0_36] : memref<1x32xf32, #tpu.memory_space<vmem>>, vector<1x32xf32>
    %c0_37 = arith.constant 0 : index
    %c0_38 = arith.constant 0 : index
    %60 = vector.load %arg17[%c0_37, %c0_38] : memref<1x32xf32, #tpu.memory_space<vmem>>, vector<1x32xf32>
    %61 = tpu.iota {dimensions = array<i32: 1>} : vector<2x16x32xi32>
    %c2_i32 = arith.constant 2 : i32
    %62 = tpu.dynamic_rotate %57 by %c2_i32 dim 1 : vector<2x16x32xf32>, i32 -> vector<2x16x32xf32>
    %c2_i32_39 = arith.constant 2 : i32
    %63 = vector.broadcast %c2_i32_39 : i32 to vector<2x16x32xi32>
    %64 = arith.cmpi sge, %61, %63 : vector<2x16x32xi32>
    %cst_40 = arith.constant 0.000000e+00 : f32
    %65 = vector.broadcast %cst_40 : f32 to vector<2x16x32xf32>
    %66 = arith.select %64, %62, %65 : vector<2x16x32xi1>, vector<2x16x32xf32>
    %67 = vector.shape_cast %66 : vector<2x16x32xf32> to vector<32x32xf32>
    %c0_41 = arith.constant 0 : index
    %c0_42 = arith.constant 0 : index
    %68 = vector.load %arg10[%c0_41, %c0_42] : memref<32x32xf32, #tpu.memory_space<vmem>>, vector<32x32xf32>
    %cst_43 = arith.constant dense<0.000000e+00> : vector<32x32xf32>
    %69 = tpu.matmul %67, %68, %cst_43 {dimension_numbers = #tpu.dot_dimension_numbers<[1], [0], [0], [1], [0, 0, 1, 1], [], []>} : vector<32x32xf32>, vector<32x32xf32>, vector<32x32xf32> -> vector<32x32xf32>
    %70 = vector.shape_cast %57 : vector<2x16x32xf32> to vector<32x32xf32>
    %c0_44 = arith.constant 0 : index
    %c0_45 = arith.constant 0 : index
    %71 = vector.load %arg11[%c0_44, %c0_45] : memref<32x32xf32, #tpu.memory_space<vmem>>, vector<32x32xf32>
    %cst_46 = arith.constant dense<0.000000e+00> : vector<32x32xf32>
    %72 = tpu.matmul %70, %71, %cst_46 {dimension_numbers = #tpu.dot_dimension_numbers<[1], [0], [0], [1], [0, 0, 1, 1], [], []>} : vector<32x32xf32>, vector<32x32xf32>, vector<32x32xf32> -> vector<32x32xf32>
    %73 = arith.addf %69, %72 : vector<32x32xf32>
    %74 = vector.broadcast %58 : vector<1x32xf32> to vector<32x32xf32>
    %75 = arith.addf %73, %74 : vector<32x32xf32>
    %76 = vector.shape_cast %75 : vector<32x32xf32> to vector<2x16x32xf32>
    %cst_47 = arith.constant 0.000000e+00 : f32
    %77 = vector.broadcast %cst_47 : f32 to vector<2x16x32xf32>
    %78 = arith.cmpf oge, %76, %77 : vector<2x16x32xf32>
    %cst_48 = arith.constant 0.00999999977 : f32
    %79 = vector.broadcast %cst_48 : f32 to vector<2x16x32xf32>
    %80 = arith.mulf %79, %76 : vector<2x16x32xf32>
    %81 = arith.select %78, %76, %80 : vector<2x16x32xi1>, vector<2x16x32xf32>
    %82 = tpu.iota {dimensions = array<i32: 1>} : vector<2x16x32xi32>
    %c2_i32_49 = arith.constant 2 : i32
    %83 = tpu.dynamic_rotate %81 by %c2_i32_49 dim 1 : vector<2x16x32xf32>, i32 -> vector<2x16x32xf32>
    %c2_i32_50 = arith.constant 2 : i32
    %84 = vector.broadcast %c2_i32_50 : i32 to vector<2x16x32xi32>
    %85 = arith.cmpi sge, %82, %84 : vector<2x16x32xi32>
    %cst_51 = arith.constant 0.000000e+00 : f32
    %86 = vector.broadcast %cst_51 : f32 to vector<2x16x32xf32>
    %87 = arith.select %85, %83, %86 : vector<2x16x32xi1>, vector<2x16x32xf32>
    %88 = vector.shape_cast %87 : vector<2x16x32xf32> to vector<32x32xf32>
    %c0_52 = arith.constant 0 : index
    %c0_53 = arith.constant 0 : index
    %89 = vector.load %arg13[%c0_52, %c0_53] : memref<32x32xf32, #tpu.memory_space<vmem>>, vector<32x32xf32>
    %cst_54 = arith.constant dense<0.000000e+00> : vector<32x32xf32>
    %90 = tpu.matmul %88, %89, %cst_54 {dimension_numbers = #tpu.dot_dimension_numbers<[1], [0], [0], [1], [0, 0, 1, 1], [], []>} : vector<32x32xf32>, vector<32x32xf32>, vector<32x32xf32> -> vector<32x32xf32>
    %91 = vector.shape_cast %81 : vector<2x16x32xf32> to vector<32x32xf32>
    %c0_55 = arith.constant 0 : index
    %c0_56 = arith.constant 0 : index
    %92 = vector.load %arg14[%c0_55, %c0_56] : memref<32x32xf32, #tpu.memory_space<vmem>>, vector<32x32xf32>
    %cst_57 = arith.constant dense<0.000000e+00> : vector<32x32xf32>
    %93 = tpu.matmul %91, %92, %cst_57 {dimension_numbers = #tpu.dot_dimension_numbers<[1], [0], [0], [1], [0, 0, 1, 1], [], []>} : vector<32x32xf32>, vector<32x32xf32>, vector<32x32xf32> -> vector<32x32xf32>
    %94 = arith.addf %90, %93 : vector<32x32xf32>
    %95 = vector.broadcast %59 : vector<1x32xf32> to vector<32x32xf32>
    %96 = arith.addf %94, %95 : vector<32x32xf32>
    %97 = vector.shape_cast %96 : vector<32x32xf32> to vector<2x16x32xf32>
    %cst_58 = arith.constant 0.000000e+00 : f32
    %98 = vector.broadcast %cst_58 : f32 to vector<2x16x32xf32>
    %99 = arith.cmpf oge, %97, %98 : vector<2x16x32xf32>
    %cst_59 = arith.constant 0.00999999977 : f32
    %100 = vector.broadcast %cst_59 : f32 to vector<2x16x32xf32>
    %101 = arith.mulf %100, %97 : vector<2x16x32xf32>
    %102 = arith.select %99, %97, %101 : vector<2x16x32xi1>, vector<2x16x32xf32>
    %103 = vector.shape_cast %57 : vector<2x16x32xf32> to vector<32x32xf32>
    %c0_60 = arith.constant 0 : index
    %c0_61 = arith.constant 0 : index
    %104 = vector.load %arg16[%c0_60, %c0_61] : memref<32x32xf32, #tpu.memory_space<vmem>>, vector<32x32xf32>
    %cst_62 = arith.constant dense<0.000000e+00> : vector<32x32xf32>
    %105 = tpu.matmul %103, %104, %cst_62 {dimension_numbers = #tpu.dot_dimension_numbers<[1], [0], [0], [1], [0, 0, 1, 1], [], []>} : vector<32x32xf32>, vector<32x32xf32>, vector<32x32xf32> -> vector<32x32xf32>
    %106 = vector.broadcast %60 : vector<1x32xf32> to vector<32x32xf32>
    %107 = arith.addf %105, %106 : vector<32x32xf32>
    %108 = vector.shape_cast %107 : vector<32x32xf32> to vector<2x16x32xf32>
    %109 = arith.addf %102, %108 : vector<2x16x32xf32>
    %cst_63 = arith.constant 0.000000e+00 : f32
    %110 = vector.broadcast %cst_63 : f32 to vector<2x16x32xf32>
    %111 = arith.cmpf oge, %109, %110 : vector<2x16x32xf32>
    %cst_64 = arith.constant 0.00999999977 : f32
    %112 = vector.broadcast %cst_64 : f32 to vector<2x16x32xf32>
    %113 = arith.mulf %112, %109 : vector<2x16x32xf32>
    %114 = arith.select %111, %109, %113 : vector<2x16x32xi1>, vector<2x16x32xf32>
    %c0_65 = arith.constant 0 : index
    %c0_66 = arith.constant 0 : index
    %115 = vector.load %arg20[%c0_65, %c0_66] : memref<1x16xf32, #tpu.memory_space<vmem>>, vector<1x16xf32>
    %c0_67 = arith.constant 0 : index
    %c0_68 = arith.constant 0 : index
    %116 = vector.load %arg23[%c0_67, %c0_68] : memref<1x16xf32, #tpu.memory_space<vmem>>, vector<1x16xf32>
    %c0_69 = arith.constant 0 : index
    %c0_70 = arith.constant 0 : index
    %117 = vector.load %arg25[%c0_69, %c0_70] : memref<1x16xf32, #tpu.memory_space<vmem>>, vector<1x16xf32>
    %118 = tpu.iota {dimensions = array<i32: 1>} : vector<2x16x32xi32>
    %c4_i32 = arith.constant 4 : i32
    %119 = tpu.dynamic_rotate %114 by %c4_i32 dim 1 : vector<2x16x32xf32>, i32 -> vector<2x16x32xf32>
    %c4_i32_71 = arith.constant 4 : i32
    %120 = vector.broadcast %c4_i32_71 : i32 to vector<2x16x32xi32>
    %121 = arith.cmpi sge, %118, %120 : vector<2x16x32xi32>
    %cst_72 = arith.constant 0.000000e+00 : f32
    %122 = vector.broadcast %cst_72 : f32 to vector<2x16x32xf32>
    %123 = arith.select %121, %119, %122 : vector<2x16x32xi1>, vector<2x16x32xf32>
    %124 = vector.shape_cast %123 : vector<2x16x32xf32> to vector<32x32xf32>
    %c0_73 = arith.constant 0 : index
    %c0_74 = arith.constant 0 : index
    %125 = vector.load %arg18[%c0_73, %c0_74] : memref<32x16xf32, #tpu.memory_space<vmem>>, vector<32x16xf32>
    %cst_75 = arith.constant dense<0.000000e+00> : vector<32x16xf32>
    %126 = tpu.matmul %124, %125, %cst_75 {dimension_numbers = #tpu.dot_dimension_numbers<[1], [0], [0], [1], [0, 0, 1, 1], [], []>} : vector<32x32xf32>, vector<32x16xf32>, vector<32x16xf32> -> vector<32x16xf32>
    %127 = vector.shape_cast %114 : vector<2x16x32xf32> to vector<32x32xf32>
    %c0_76 = arith.constant 0 : index
    %c0_77 = arith.constant 0 : index
    %128 = vector.load %arg19[%c0_76, %c0_77] : memref<32x16xf32, #tpu.memory_space<vmem>>, vector<32x16xf32>
    %cst_78 = arith.constant dense<0.000000e+00> : vector<32x16xf32>
    %129 = tpu.matmul %127, %128, %cst_78 {dimension_numbers = #tpu.dot_dimension_numbers<[1], [0], [0], [1], [0, 0, 1, 1], [], []>} : vector<32x32xf32>, vector<32x16xf32>, vector<32x16xf32> -> vector<32x16xf32>
    %130 = arith.addf %126, %129 : vector<32x16xf32>
    %131 = vector.broadcast %115 : vector<1x16xf32> to vector<32x16xf32>
    %132 = arith.addf %130, %131 : vector<32x16xf32>
    %133 = vector.shape_cast %132 : vector<32x16xf32> to vector<2x16x16xf32>
    %cst_79 = arith.constant 0.000000e+00 : f32
    %134 = vector.broadcast %cst_79 : f32 to vector<2x16x16xf32>
    %135 = arith.cmpf oge, %133, %134 : vector<2x16x16xf32>
    %cst_80 = arith.constant 0.00999999977 : f32
    %136 = vector.broadcast %cst_80 : f32 to vector<2x16x16xf32>
    %137 = arith.mulf %136, %133 : vector<2x16x16xf32>
    %138 = arith.select %135, %133, %137 : vector<2x16x16xi1>, vector<2x16x16xf32>
    %139 = tpu.iota {dimensions = array<i32: 1>} : vector<2x16x16xi32>
    %c4_i32_81 = arith.constant 4 : i32
    %140 = tpu.dynamic_rotate %138 by %c4_i32_81 dim 1 : vector<2x16x16xf32>, i32 -> vector<2x16x16xf32>
    %c4_i32_82 = arith.constant 4 : i32
    %141 = vector.broadcast %c4_i32_82 : i32 to vector<2x16x16xi32>
    %142 = arith.cmpi sge, %139, %141 : vector<2x16x16xi32>
    %cst_83 = arith.constant 0.000000e+00 : f32
    %143 = vector.broadcast %cst_83 : f32 to vector<2x16x16xf32>
    %144 = arith.select %142, %140, %143 : vector<2x16x16xi1>, vector<2x16x16xf32>
    %145 = vector.shape_cast %144 : vector<2x16x16xf32> to vector<32x16xf32>
    %c0_84 = arith.constant 0 : index
    %c0_85 = arith.constant 0 : index
    %146 = vector.load %arg21[%c0_84, %c0_85] : memref<16x16xf32, #tpu.memory_space<vmem>>, vector<16x16xf32>
    %cst_86 = arith.constant dense<0.000000e+00> : vector<32x16xf32>
    %147 = tpu.matmul %145, %146, %cst_86 {dimension_numbers = #tpu.dot_dimension_numbers<[1], [0], [0], [1], [0, 0, 1, 1], [], []>} : vector<32x16xf32>, vector<16x16xf32>, vector<32x16xf32> -> vector<32x16xf32>
    %148 = vector.shape_cast %138 : vector<2x16x16xf32> to vector<32x16xf32>
    %c0_87 = arith.constant 0 : index
    %c0_88 = arith.constant 0 : index
    %149 = vector.load %arg22[%c0_87, %c0_88] : memref<16x16xf32, #tpu.memory_space<vmem>>, vector<16x16xf32>
    %cst_89 = arith.constant dense<0.000000e+00> : vector<32x16xf32>
    %150 = tpu.matmul %148, %149, %cst_89 {dimension_numbers = #tpu.dot_dimension_numbers<[1], [0], [0], [1], [0, 0, 1, 1], [], []>} : vector<32x16xf32>, vector<16x16xf32>, vector<32x16xf32> -> vector<32x16xf32>
    %151 = arith.addf %147, %150 : vector<32x16xf32>
    %152 = vector.broadcast %116 : vector<1x16xf32> to vector<32x16xf32>
    %153 = arith.addf %151, %152 : vector<32x16xf32>
    %154 = vector.shape_cast %153 : vector<32x16xf32> to vector<2x16x16xf32>
    %cst_90 = arith.constant 0.000000e+00 : f32
    %155 = vector.broadcast %cst_90 : f32 to vector<2x16x16xf32>
    %156 = arith.cmpf oge, %154, %155 : vector<2x16x16xf32>
    %cst_91 = arith.constant 0.00999999977 : f32
    %157 = vector.broadcast %cst_91 : f32 to vector<2x16x16xf32>
    %158 = arith.mulf %157, %154 : vector<2x16x16xf32>
    %159 = arith.select %156, %154, %158 : vector<2x16x16xi1>, vector<2x16x16xf32>
    %160 = vector.shape_cast %114 : vector<2x16x32xf32> to vector<32x32xf32>
    %c0_92 = arith.constant 0 : index
    %c0_93 = arith.constant 0 : index
    %161 = vector.load %arg24[%c0_92, %c0_93] : memref<32x16xf32, #tpu.memory_space<vmem>>, vector<32x16xf32>
    %cst_94 = arith.constant dense<0.000000e+00> : vector<32x16xf32>
    %162 = tpu.matmul %160, %161, %cst_94 {dimension_numbers = #tpu.dot_dimension_numbers<[1], [0], [0], [1], [0, 0, 1, 1], [], []>} : vector<32x32xf32>, vector<32x16xf32>, vector<32x16xf32> -> vector<32x16xf32>
    %163 = vector.broadcast %117 : vector<1x16xf32> to vector<32x16xf32>
    %164 = arith.addf %162, %163 : vector<32x16xf32>
    %165 = vector.shape_cast %164 : vector<32x16xf32> to vector<2x16x16xf32>
    %166 = arith.addf %159, %165 : vector<2x16x16xf32>
    %cst_95 = arith.constant 0.000000e+00 : f32
    %167 = vector.broadcast %cst_95 : f32 to vector<2x16x16xf32>
    %168 = arith.cmpf oge, %166, %167 : vector<2x16x16xf32>
    %cst_96 = arith.constant 0.00999999977 : f32
    %169 = vector.broadcast %cst_96 : f32 to vector<2x16x16xf32>
    %170 = arith.mulf %169, %166 : vector<2x16x16xf32>
    %171 = arith.select %168, %166, %170 : vector<2x16x16xi1>, vector<2x16x16xf32>
    %c0_97 = arith.constant 0 : index
    %c0_98 = arith.constant 0 : index
    %c0_99 = arith.constant 0 : index
    %172 = vector.load %arg26[%c0_97, %c0_98, %c0_99] : memref<2x16x16xf32, #tpu.memory_space<vmem>>, vector<2x16x16xf32>
    tpu.vector_store %arg26[%c0_97, %c0_98, %c0_99], %171 {strides = array<i32>} : memref<2x16x16xf32, #tpu.memory_space<vmem>>, vector<2x16x16xf32>,
    return
  }
  func.func @transform_0(%arg0: i32) -> (i32, i32, i32) {
    %c0_i32 = arith.constant 0 : i32
    %c0_i32_0 = arith.constant 0 : i32
    %c0_i32_1 = arith.constant 0 : i32
    return %arg0, %c0_i32, %c0_i32_0 : i32, i32, i32
  }
  func.func @transform_1(%arg0: i32) -> (i32, i32) {
    %c0_i32 = arith.constant 0 : i32
    %c0_i32_0 = arith.constant 0 : i32
    %c0_i32_1 = arith.constant 0 : i32
    return %c0_i32, %c0_i32_0 : i32, i32
  }
  func.func @transform_2(%arg0: i32) -> (i32, i32) {
    %c0_i32 = arith.constant 0 : i32
    %c0_i32_0 = arith.constant 0 : i32
    %c0_i32_1 = arith.constant 0 : i32
    return %c0_i32, %c0_i32_0 : i32, i32
  }
  func.func @transform_3(%arg0: i32) -> (i32, i32) {
    %c0_i32 = arith.constant 0 : i32
    %c0_i32_0 = arith.constant 0 : i32
    %c0_i32_1 = arith.constant 0 : i32
    return %c0_i32, %c0_i32_0 : i32, i32
  }
  func.func @transform_4(%arg0: i32) -> (i32, i32) {
    %c0_i32 = arith.constant 0 : i32
    %c0_i32_0 = arith.constant 0 : i32
    %c0_i32_1 = arith.constant 0 : i32
    return %c0_i32, %c0_i32_0 : i32, i32
  }
  func.func @transform_5(%arg0: i32) -> (i32, i32) {
    %c0_i32 = arith.constant 0 : i32
    %c0_i32_0 = arith.constant 0 : i32
    %c0_i32_1 = arith.constant 0 : i32
    return %c0_i32, %c0_i32_0 : i32, i32
  }
  func.func @transform_6(%arg0: i32) -> (i32, i32) {
    %c0_i32 = arith.constant 0 : i32
    %c0_i32_0 = arith.constant 0 : i32
    %c0_i32_1 = arith.constant 0 : i32
    return %c0_i32, %c0_i32_0 : i32, i32
  }
  func.func @transform_7(%arg0: i32) -> (i32, i32) {
    %c0_i32 = arith.constant 0 : i32
    %c0_i32_0 = arith.constant 0 : i32
    %c0_i32_1 = arith.constant 0 : i32
    return %c0_i32, %c0_i32_0 : i32, i32
  }
  func.func @transform_8(%arg0: i32) -> (i32, i32) {
    %c0_i32 = arith.constant 0 : i32
    %c0_i32_0 = arith.constant 0 : i32
    %c0_i32_1 = arith.constant 0 : i32
    return %c0_i32, %c0_i32_0 : i32, i32
  }
  func.func @transform_9(%arg0: i32) -> (i32, i32) {
    %c0_i32 = arith.constant 0 : i32
    %c0_i32_0 = arith.constant 0 : i32
    %c0_i32_1 = arith.constant 0 : i32
    return %c0_i32, %c0_i32_0 : i32, i32
  }
  func.func @transform_10(%arg0: i32) -> (i32, i32) {
    %c0_i32 = arith.constant 0 : i32
    %c0_i32_0 = arith.constant 0 : i32
    %c0_i32_1 = arith.constant 0 : i32
    return %c0_i32, %c0_i32_0 : i32, i32
  }
  func.func @transform_11(%arg0: i32) -> (i32, i32) {
    %c0_i32 = arith.constant 0 : i32
    %c0_i32_0 = arith.constant 0 : i32
    %c0_i32_1 = arith.constant 0 : i32
    return %c0_i32, %c0_i32_0 : i32, i32
  }
  func.func @transform_12(%arg0: i32) -> (i32, i32) {
    %c0_i32 = arith.constant 0 : i32
    %c0_i32_0 = arith.constant 0 : i32
    %c0_i32_1 = arith.constant 0 : i32
    return %c0_i32, %c0_i32_0 : i32, i32
  }
  func.func @transform_13(%arg0: i32) -> (i32, i32) {
    %c0_i32 = arith.constant 0 : i32
    %c0_i32_0 = arith.constant 0 : i32
    %c0_i32_1 = arith.constant 0 : i32
    return %c0_i32, %c0_i32_0 : i32, i32
  }
  func.func @transform_14(%arg0: i32) -> (i32, i32) {
    %c0_i32 = arith.constant 0 : i32
    %c0_i32_0 = arith.constant 0 : i32
    %c0_i32_1 = arith.constant 0 : i32
    return %c0_i32, %c0_i32_0 : i32, i32
  }
  func.func @transform_15(%arg0: i32) -> (i32, i32) {
    %c0_i32 = arith.constant 0 : i32
    %c0_i32_0 = arith.constant 0 : i32
    %c0_i32_1 = arith.constant 0 : i32
    return %c0_i32, %c0_i32_0 : i32, i32
  }
  func.func @transform_16(%arg0: i32) -> (i32, i32) {
    %c0_i32 = arith.constant 0 : i32
    %c0_i32_0 = arith.constant 0 : i32
    %c0_i32_1 = arith.constant 0 : i32
    return %c0_i32, %c0_i32_0 : i32, i32
  }
  func.func @transform_17(%arg0: i32) -> (i32, i32) {
    %c0_i32 = arith.constant 0 : i32
    %c0_i32_0 = arith.constant 0 : i32
    %c0_i32_1 = arith.constant 0 : i32
    return %c0_i32, %c0_i32_0 : i32, i32
  }
  func.func @transform_18(%arg0: i32) -> (i32, i32) {
    %c0_i32 = arith.constant 0 : i32
    %c0_i32_0 = arith.constant 0 : i32
    %c0_i32_1 = arith.constant 0 : i32
    return %c0_i32, %c0_i32_0 : i32, i32
  }
  func.func @transform_19(%arg0: i32) -> (i32, i32) {
    %c0_i32 = arith.constant 0 : i32
    %c0_i32_0 = arith.constant 0 : i32
    %c0_i32_1 = arith.constant 0 : i32
    return %c0_i32, %c0_i32_0 : i32, i32
  }
  func.func @transform_20(%arg0: i32) -> (i32, i32) {
    %c0_i32 = arith.constant 0 : i32
    %c0_i32_0 = arith.constant 0 : i32
    %c0_i32_1 = arith.constant 0 : i32
    return %c0_i32, %c0_i32_0 : i32, i32
  }
  func.func @transform_21(%arg0: i32) -> (i32, i32) {
    %c0_i32 = arith.constant 0 : i32
    %c0_i32_0 = arith.constant 0 : i32
    %c0_i32_1 = arith.constant 0 : i32
    return %c0_i32, %c0_i32_0 : i32, i32
  }
  func.func @transform_22(%arg0: i32) -> (i32, i32) {
    %c0_i32 = arith.constant 0 : i32
    %c0_i32_0 = arith.constant 0 : i32
    %c0_i32_1 = arith.constant 0 : i32
    return %c0_i32, %c0_i32_0 : i32, i32
  }
  func.func @transform_23(%arg0: i32) -> (i32, i32) {
    %c0_i32 = arith.constant 0 : i32
    %c0_i32_0 = arith.constant 0 : i32
    %c0_i32_1 = arith.constant 0 : i32
    return %c0_i32, %c0_i32_0 : i32, i32
  }
  func.func @transform_24(%arg0: i32) -> (i32, i32) {
    %c0_i32 = arith.constant 0 : i32
    %c0_i32_0 = arith.constant 0 : i32
    %c0_i32_1 = arith.constant 0 : i32
    return %c0_i32, %c0_i32_0 : i32, i32
  }
  func.func @transform_25(%arg0: i32) -> (i32, i32, i32) {
    %c0_i32 = arith.constant 0 : i32
    %c0_i32_0 = arith.constant 0 : i32
    %c0_i32_1 = arith.constant 0 : i32
    return %arg0, %c0_i32, %c0_i32_0 : i32, i32, i32
  }
}

</mosaic_0001>

<bundles_post_ra>
// kernel: tpu_custom_call.1
= control target key start
LH: loop header
LB: loop body
LE: loop exit
PB: predicated region body
PF: predicated region fallthrough
CT: control target
= control target key end

     0   :  { %s3294_s0 = inlined_call_operand.vmem [shape: f32[2,16,4], index: 0, kind: input, shape index: {}]   ;;  %s3295_s1 = inlined_call_operand.hbm [shape: f32[4,32], index: 1, kind: input, shape index: {}]   ;;  %s3296_s2 = inlined_call_operand.hbm [shape: f32[4,32], index: 2, kind: input, shape index: {}]   ;;  %s3297_s3 = inlined_call_operand.hbm [shape: f32[1,32], index: 3, kind: input, shape index: {}]   ;;  %s3298_s4 = inlined_call_operand.vmem [shape: f32[32,32], index: 4, kind: input, shape index: {}]   ;;  %s3299_s5 = inlined_call_operand.vmem [shape: f32[32,32], index: 5, kind: input, shape index: {}]   ;;  %s3300_s6 = inlined_call_operand.hbm [shape: f32[1,32], index: 6, kind: input, shape index: {}]   ;;  %s3301_s7 = inlined_call_operand.hbm [shape: f32[4,32], index: 7, kind: input, shape index: {}]   ;;  %s3302_s8 = inlined_call_operand.hbm [shape: f32[1,32], index: 8, kind: input, shape index: {}]   ;;  %s3303_s9 = inlined_call_operand.vmem [shape: f32[32,32], index: 9, kind: input, shape index: {}]   ;;  %s3304_s10 = inlined_call_operand.vmem [shape: f32[32,32], index: 10, kind: input, shape index: {}]   ;;  %s3305_s11 = inlined_call_operand.hbm [shape: f32[1,32], index: 11, kind: input, shape index: {}]   ;;  %s3306_s12 = inlined_call_operand.vmem [shape: f32[32,32], index: 12, kind: input, shape index: {}]   ;;  %s3307_s13 = inlined_call_operand.vmem [shape: f32[32,32], index: 13, kind: input, shape index: {}]   ;;  %s3308_s14 = inlined_call_operand.hbm [shape: f32[1,32], index: 14, kind: input, shape index: {}]   ;;  %s3309_s15 = inlined_call_operand.hbm [shape: f32[32,32], index: 15, kind: input, shape index: {}]   ;;  %s3310_s16 = inlined_call_operand.hbm [shape: f32[1,32], index: 16, kind: input, shape index: {}]   ;;  %s3311_s17 = inlined_call_operand.vmem [shape: f32[32,16], index: 17, kind: input, shape index: {}]   ;;  %s3312_s18 = inlined_call_operand.vmem [shape: f32[32,16], index: 18, kind: input, shape index: {}]   ;;  %s3313_s19 = inlined_call_operand.hbm [shape: f32[1,16], index: 19, kind: input, shape index: {}]   ;;  %s3314_s20 = inlined_call_operand.hbm [shape: f32[16,16], index: 20, kind: input, shape index: {}]   ;;  %s3315_s21 = inlined_call_operand.hbm [shape: f32[16,16], index: 21, kind: input, shape index: {}]   ;;  %s3316_s22 = inlined_call_operand.hbm [shape: f32[1,16], index: 22, kind: input, shape index: {}]   ;;  %s3317_s23 = inlined_call_operand.vmem [shape: f32[32,16], index: 23, kind: input, shape index: {}]   ;;  %s3318_s24 = inlined_call_operand.vmem [shape: f32[1,16], index: 24, kind: input, shape index: {}]   ;;  %s3319_s25 = inlined_call_operand.hbm [shape: f32[2,16,16], index: 25, kind: output, shape index: {}]  }
   0x1   :  { %3324 = sst [smem:[#allocation35_spill]] %s3294_s0 }
   0x2   :  { %3325 = sst [smem:[#allocation36_spill]] %s3295_s1 }
   0x3   :  { %3326 = sst [smem:[#allocation37_spill]] %s3296_s2 }
   0x4   :  { %3327 = sst [smem:[#allocation38_spill]] %s3297_s3 }
   0x5   :  { %3328 = sst [smem:[#allocation39_spill]] %s3298_s4 }
   0x6   :  { %3329 = sst [smem:[#allocation40_spill]] %s3299_s5 }
   0x7   :  { %3330 = sst [smem:[#allocation41_spill]] %s3300_s6 }
   0x8   :  { %3331 = sst [smem:[#allocation42_spill]] %s3301_s7 }
   0x9   :  { %3332 = sst [smem:[#allocation43_spill]] %s3302_s8 }
   0xa   :  { %3333 = sst [smem:[#allocation44_spill]] %s3303_s9 }
   0xb   :  { %30 = vsyncpa [#allocation3], 0 }
   0xc   :  { %31 = vsyncpa [#allocation6], 0 }
   0xd   :  { %32 = vsyncpa [#allocation9], 0 }
   0xe   :  { %33 = vsyncpa [#allocation12], 0 }
   0xf   :  { %34 = vsyncpa [#allocation15], 0 }
  0x10   :  { %35 = vsyncpa [#allocation18], 0 }
  0x11   :  { %36 = vsyncpa [#allocation21], 0 }
  0x12   :  { %37 = vsyncpa [#allocation24], 0 }
  0x13   :  { %38 = vsyncpa [#allocation4], 0  ;;  %s2757_s29 = smov [#allocation5]   ;;  %s2758_s6 = smov [#allocation8]  }
  0x14   :  { %s57_s2 = sshll.u32 %s2757_s29, 4  ;;  %s81_s30 = sshll.u32 %s2758_s6, 4  ;;  %s58_s2 = int_to_ptr.vmem [resolvable:$true] %s57_s2  ;;  %s82_s30 = int_to_ptr.vmem [resolvable:$true] %s81_s30 }
  0x15   :  { %s2447_s7 = scalar_lea.vmem %s58_s2, 64  ;;  %p2452_p1 = scmp.lt.s32.totalorder %s58_s2, %s58_s2 }
  0x16   :  { %p2448_p0 = scmp.ne.s32.totalorder %s58_s2, %s2447_s7  ;;  %p2453_p2 = scmp.lt.s32.totalorder %s2447_s7, %s2447_s7 }
  0x18   :  { %p2454_p3 = por %p2453_p2, %p2452_p1 }
  0x1a   :  { %p2455_p4 = pnand %p2454_p3, %p2448_p0 }
  0x1c   :  { %2458 = shalt.err (!%p2455_p4)
}
  0x1d   :  { %s3334_s1 = sld [smem:[#allocation37_spill]]  ;;  %s2467_s8 = scalar_lea.vmem %s82_s30, 16 }
  0x1e   :  { %p2468_p5 = scmp.ne.s32.totalorder %s82_s30, %s2467_s8  ;;  %s2471_s27 = scalar_lea.vmem %s82_s30, 32 }
  0x1f   :  { %p2472_p6 = scmp.lt.s32.totalorder %s82_s30, %s82_s30  ;;  %p2473_p7 = scmp.lt.s32.totalorder %s2471_s27, %s2467_s8 }
  0x21   :  { %p2474_p8 = por %p2473_p7, %p2472_p6 }
  0x23   :  { %60 = dma.hbm_to_vmem [thread:$0]  %s3334_s1, 64, %s58_s2, [#allocation6]  }
  0x24   :  { %p2475_p9 = pnand %p2474_p8, %p2468_p5 }
  0x26   :  { %2478 = shalt.err (!%p2475_p9)
}
  0x27   :  { %s3335_s9 = sld [smem:[#allocation41_spill]]  ;;  %s2759_s5 = smov [#allocation11]  }
  0x28   :  { %s101_s0 = sshll.u32 %s2759_s5, 4  ;;  %s2760_s29 = smov [#allocation14]   ;;  %s102_s0 = int_to_ptr.vmem [resolvable:$true] %s101_s0 }
  0x29   :  { %s129_s6 = sshll.u32 %s2760_s29, 4  ;;  %s2487_s7 = scalar_lea.vmem %s102_s0, 16  ;;  %s130_s6 = int_to_ptr.vmem [resolvable:$true] %s129_s6 }
  0x2a   :  { %p2488_p10 = scmp.ne.s32.totalorder %s102_s0, %s2487_s7  ;;  %s2491_s2 = scalar_lea.vmem %s102_s0, 32 }
  0x2b   :  { %p2492_p11 = scmp.lt.s32.totalorder %s102_s0, %s102_s0  ;;  %p2493_p12 = scmp.lt.s32.totalorder %s2491_s2, %s2487_s7 }
  0x2d   :  { %84 = dma.hbm_to_vmem [thread:$0]  %s3335_s9, 16, %s82_s30, [#allocation9]  }
  0x2e   :  { %p2494_p13 = por %p2493_p12, %p2492_p11 }
  0x30   :  { %p2495_p0 = pnand %p2494_p13, %p2488_p10 }
  0x32   :  { %2498 = shalt.err (!%p2495_p0)
}
  0x33   :  { %s3336_s1 = sld [smem:[#allocation43_spill]]  ;;  %s2507_s8 = scalar_lea.vmem %s130_s6, 16 }
  0x34   :  { %p2508_p1 = scmp.ne.s32.totalorder %s130_s6, %s2507_s8  ;;  %s2511_s30 = scalar_lea.vmem %s130_s6, 32 }
  0x35   :  { %p2512_p2 = scmp.lt.s32.totalorder %s130_s6, %s130_s6  ;;  %p2513_p3 = scmp.lt.s32.totalorder %s2511_s30, %s2507_s8 }
  0x37   :  { %p2514_p4 = por %p2513_p3, %p2512_p2 }
  0x39   :  { %104 = dma.hbm_to_vmem [thread:$0]  %s3336_s1, 16, %s102_s0, [#allocation12]  }
  0x3a   :  { %p2515_p5 = pnand %p2514_p4, %p2508_p1 }
  0x3c   :  { %2518 = shalt.err (!%p2515_p5)
}
  0x3d   :  { %132 = dma.hbm_to_vmem [thread:$0]  %s3308_s14, 16, %s130_s6, [#allocation15]  }
  0x3e   :  { %s2761_s28 = smov [#allocation17]  }
  0x3f   :  { %s151_s9 = sshll.u32 %s2761_s28, 4  ;;  %s152_s9 = int_to_ptr.vmem [resolvable:$true] %s151_s9 }
  0x40   :  { %s2527_s5 = scalar_lea.vmem %s152_s9, 16  ;;  %s2531_s29 = scalar_lea.vmem %s152_s9, 32 }
  0x41   :  { %p2528_p6 = scmp.ne.s32.totalorder %s152_s9, %s2527_s5  ;;  %p2532_p7 = scmp.lt.s32.totalorder %s152_s9, %s152_s9 }
  0x42   :  { %p2533_p8 = scmp.lt.s32.totalorder %s2531_s29, %s2527_s5 }
  0x44   :  { %p2534_p9 = por %p2533_p8, %p2532_p7 }
  0x46   :  { %p2535_p10 = pnand %p2534_p9, %p2528_p6 }
  0x48   :  { %2538 = shalt.err (!%p2535_p10)
}
  0x49   :  { %154 = dma.hbm_to_vmem [thread:$0]  %s3310_s16, 16, %s152_s9, [#allocation18]  }
  0x4a   :  { %s2762_s2 = smov [#allocation20]   ;;  %s2763_s26 = smov [#allocation2]  }
  0x4b   :  { %s174_s3 = sshll.u32 %s2762_s2, 4  ;;  %s47_s14 = sshll.u32 %s2763_s26, 4  ;;  %s175_s3 = int_to_ptr.vmem [resolvable:$true] %s174_s3  ;;  %s48_s14 = int_to_ptr.vmem [resolvable:$true] %s47_s14 }
  0x4c   :  { %s2547_s6 = scalar_lea.vmem %s175_s3, 256  ;;  %p2552_p12 = scmp.lt.s32.totalorder %s175_s3, %s175_s3 }
  0x4d   :  { %p2548_p11 = scmp.ne.s32.totalorder %s175_s3, %s2547_s6  ;;  %p2553_p13 = scmp.lt.s32.totalorder %s2547_s6, %s2547_s6 }
  0x4f   :  { %p2554_p0 = por %p2553_p13, %p2552_p12 }
  0x51   :  { %p2555_p1 = pnand %p2554_p0, %p2548_p11 }
  0x53   :  { %2558 = shalt.err (!%p2555_p1)
}
  0x54   :  { %s2764_s1 = smov 128   ;;  %s2765_s8 = smov 8  }
  0x55   :  { %180 = dma.hbm_to_vmem [thread:$0]  %s3314_s20, 256, %s175_s3, [#allocation21], %s2764_s1, %s2764_s1, %s2765_s8  }
  0x56   :  { %s2567_s16 = scalar_lea.vmem %s48_s14, 64  ;;  %p2572_p3 = scmp.lt.s32.totalorder %s48_s14, %s48_s14 }
  0x57   :  { %p2568_p2 = scmp.ne.s32.totalorder %s48_s14, %s2567_s16  ;;  %p2573_p4 = scmp.lt.s32.totalorder %s2567_s16, %s2567_s16 }
  0x59   :  { %p2574_p5 = por %p2573_p4, %p2572_p3 }
  0x5b   :  { %p2575_p6 = pnand %p2574_p5, %p2568_p2 }
  0x5d   :  { %2578 = shalt.err (!%p2575_p6)
}
  0x5e   :  { %s3337_s9 = sld [smem:[#allocation36_spill]]  ;;  %s2766_s5 = smov [#allocation7]  }
  0x5f   :  { %s67_s29 = sshll.u32 %s2766_s5, 4  ;;  %s2767_s0 = smov [#allocation10]   ;;  %s68_s29 = int_to_ptr.vmem [resolvable:$true] %s67_s29 }
  0x60   :  { %s91_s7 = sshll.u32 %s2767_s0, 4  ;;  %s2587_s2 = scalar_lea.vmem %s68_s29, 16  ;;  %s92_s7 = int_to_ptr.vmem [resolvable:$true] %s91_s7 }
  0x61   :  { %p2588_p7 = scmp.ne.s32.totalorder %s68_s29, %s2587_s2  ;;  %s2591_s20 = scalar_lea.vmem %s68_s29, 32 }
  0x62   :  { %p2592_p8 = scmp.lt.s32.totalorder %s68_s29, %s68_s29  ;;  %p2593_p9 = scmp.lt.s32.totalorder %s2591_s20, %s2587_s2 }
  0x64   :  { %50 = dma.hbm_to_vmem [thread:$0]  %s3337_s9, 64, %s48_s14, [#allocation3]  }
  0x65   :  { %p2594_p10 = por %p2593_p9, %p2592_p8 }
  0x67   :  { %p2595_p11 = pnand %p2594_p10, %p2588_p7 }
  0x69   :  { %2598 = shalt.err (!%p2595_p11)
}
  0x6a   :  { %s3338_s6 = sld [smem:[#allocation38_spill]]  ;;  %s2607_s30 = scalar_lea.vmem %s92_s7, 64 }
  0x6b   :  { %p2608_p12 = scmp.ne.s32.totalorder %s92_s7, %s2607_s30  ;;  %p2612_p13 = scmp.lt.s32.totalorder %s92_s7, %s92_s7 }
  0x6c   :  { %p2613_p0 = scmp.lt.s32.totalorder %s2607_s30, %s2607_s30 }
  0x6e   :  { %p2614_p1 = por %p2613_p0, %p2612_p13 }
  0x70   :  { %70 = dma.hbm_to_vmem [thread:$0]  %s3338_s6, 16, %s68_s29, [#allocation6]  }
  0x71   :  { %p2615_p2 = pnand %p2614_p1, %p2608_p12 }
  0x73   :  { %2618 = shalt.err (!%p2615_p2)
}
  0x74   :  { %s3339_s16 = sld [smem:[#allocation42_spill]]  ;;  %s2768_s4 = smov [#allocation13]  }
  0x75   :  { %s115_s28 = sshll.u32 %s2768_s4, 4  ;;  %s2769_s9 = smov [#allocation16]   ;;  %s116_s28 = int_to_ptr.vmem [resolvable:$true] %s115_s28 }
  0x76   :  { %s138_s5 = sshll.u32 %s2769_s9, 4  ;;  %s2627_s0 = scalar_lea.vmem %s116_s28, 16  ;;  %s139_s5 = int_to_ptr.vmem [resolvable:$true] %s138_s5 }
  0x77   :  { %p2628_p3 = scmp.ne.s32.totalorder %s116_s28, %s2627_s0  ;;  %s2631_s29 = scalar_lea.vmem %s116_s28, 32 }
  0x78   :  { %p2632_p4 = scmp.lt.s32.totalorder %s116_s28, %s116_s28  ;;  %p2633_p5 = scmp.lt.s32.totalorder %s2631_s29, %s2627_s0 }
  0x7a   :  { %94 = dma.hbm_to_vmem [thread:$0]  %s3339_s16, 64, %s92_s7, [#allocation9]  }
  0x7b   :  { %p2634_p6 = por %p2633_p5, %p2632_p4 }
  0x7d   :  { %p2635_p7 = pnand %p2634_p6, %p2628_p3 }
  0x7f   :  { %2638 = shalt.err (!%p2635_p7)
}
  0x80   :  { %118 = dma.hbm_to_vmem [thread:$0]  %s3305_s11, 16, %s116_s28, [#allocation12]  }
  0x81   :  { %s2647_s3 = scalar_lea.vmem %s139_s5, 512  ;;  %p2652_p9 = scmp.lt.s32.totalorder %s139_s5, %s139_s5 }
  0x82   :  { %p2648_p8 = scmp.ne.s32.totalorder %s139_s5, %s2647_s3  ;;  %p2653_p10 = scmp.lt.s32.totalorder %s2647_s3, %s2647_s3 }
  0x84   :  { %p2654_p11 = por %p2653_p10, %p2652_p9 }
  0x86   :  { %p2655_p12 = pnand %p2654_p11, %p2648_p8 }
  0x88   :  { %2658 = shalt.err (!%p2655_p12)
}
  0x89   :  { %144 = dma.hbm_to_vmem [thread:$0]  %s3309_s15, 512, %s139_s5, [#allocation15], %s2764_s1, %s2764_s1, %s2765_s8  }
  0x8a   :  { %s2770_s6 = smov [#allocation19]   ;;  %s2771_s14 = smov [#allocation22]  }
  0x8b   :  { %s165_s30 = sshll.u32 %s2770_s6, 4  ;;  %s186_s11 = sshll.u32 %s2771_s14, 4  ;;  %s166_s30 = int_to_ptr.vmem [resolvable:$true] %s165_s30  ;;  %s187_s11 = int_to_ptr.vmem [resolvable:$true] %s186_s11 }
  0x8c   :  { %s2667_s27 = scalar_lea.vmem %s166_s30, 16  ;;  %s2671_s16 = scalar_lea.vmem %s166_s30, 32 }
  0x8d   :  { %p2668_p13 = scmp.ne.s32.totalorder %s166_s30, %s2667_s27  ;;  %p2672_p0 = scmp.lt.s32.totalorder %s166_s30, %s166_s30 }
  0x8e   :  { %p2673_p1 = scmp.lt.s32.totalorder %s2671_s16, %s2667_s27 }
  0x90   :  { %p2674_p2 = por %p2673_p1, %p2672_p0 }
  0x92   :  { %p2675_p3 = pnand %p2674_p2, %p2668_p13 }
  0x94   :  { %2678 = shalt.err (!%p2675_p3)
}
  0x95   :  { %168 = dma.hbm_to_vmem [thread:$0]  %s3313_s19, 16, %s166_s30, [#allocation18]  }
  0x96   :  { %s2687_s9 = scalar_lea.vmem %s187_s11, 256  ;;  %p2692_p5 = scmp.lt.s32.totalorder %s187_s11, %s187_s11 }
  0x97   :  { %p2688_p4 = scmp.ne.s32.totalorder %s187_s11, %s2687_s9  ;;  %p2693_p6 = scmp.lt.s32.totalorder %s2687_s9, %s2687_s9 }
  0x99   :  { %p2694_p7 = por %p2693_p6, %p2692_p5 }
  0x9b   :  { %p2695_p8 = pnand %p2694_p7, %p2688_p4 }
  0x9d   :  { %2698 = shalt.err (!%p2695_p8)
}
  0x9e   :  { %192 = dma.hbm_to_vmem [thread:$0]  %s3315_s21, 256, %s187_s11, [#allocation21], %s2764_s1, %s2764_s1, %s2765_s8  }
  0x9f   :  { %s2772_s0 = smov [#allocation23]  }
  0xa0   :  { %s199_s29 = sshll.u32 %s2772_s0, 4  ;;  %s200_s29 = int_to_ptr.vmem [resolvable:$true] %s199_s29 }
  0xa1   :  { %s2707_s2 = scalar_lea.vmem %s200_s29, 16  ;;  %s2711_s19 = scalar_lea.vmem %s200_s29, 32 }
  0xa2   :  { %p2708_p9 = scmp.ne.s32.totalorder %s200_s29, %s2707_s2  ;;  %p2712_p10 = scmp.lt.s32.totalorder %s200_s29, %s200_s29 }
  0xa3   :  { %p2713_p11 = scmp.lt.s32.totalorder %s2711_s19, %s2707_s2 }
  0xa5   :  { %p2714_p12 = por %p2713_p11, %p2712_p10 }
  0xa7   :  { %p2715_p13 = pnand %p2714_p12, %p2708_p9 }
  0xa9   :  { %2718 = shalt.err (!%p2715_p13)
}
  0xaa   :  { %202 = dma.hbm_to_vmem [thread:$0]  %s3316_s22, 16, %s200_s29, [#allocation24]  }
  0xab   :  { %2739 = dma.done.wait [#allocation3], 64  }
  0xac   :  { %2740 = vsyncadd [#allocation3], 4294967232 }
  0xad   :  { %2741 = dma.done.wait [#allocation6], 80  }
  0xae   :  { %2742 = vsyncadd [#allocation6], 4294967216 }
  0xaf   :  { %2743 = dma.done.wait [#allocation9], 80  }
  0xb0   :  { %2744 = vsyncadd [#allocation9], 4294967216 }
  0xb1   :  { %2745 = dma.done.wait [#allocation12], 32  }
  0xb2   :  { %2746 = vsyncadd [#allocation12], 4294967264 }
  0xb3   :  { %2747 = dma.done.wait [#allocation15], 528  }
  0xb4   :  { %2748 = vsyncadd [#allocation15], 4294966768 }
  0xb5   :  { %2749 = dma.done.wait [#allocation18], 32  }
  0xb6   :  { %2750 = vsyncadd [#allocation18], 4294967264 }
  0xb7   :  { %2751 = dma.done.wait [#allocation21], 512  }
  0xb8   :  { %2752 = vsyncadd [#allocation21], 4294966784 }
  0xb9   :  { %2753 = dma.done.wait [#allocation24], 16  }
  0xba   :  { %2754 = vsyncadd [#allocation24], 4294967280  ;;  %v256_v0 = vlaneseq  ;;  %vm289_vm0 = vcmask 1043456   ;;  %vm276_vm1 = vcmask 31744   ;;  %v275_v2 = vld [vmem:[#allocation5] sm:$0xf] }
  0xbb   :  { %s3340_s7 = sld [smem:[#allocation35_spill]]  ;;  %2230 = vmatprep.subr.msk.mxu0 %vm289_vm0, %v275_v2  ;;  %v274_v7 = vld [vmem:[#allocation2] sm:$0xf]  ;;  %v737_v25 = vld [vmem:[#allocation10] sm:$0xf]  ;;  %vm520_vm5 = vcmask 261120  }
  0xbc   :  { %v2955_v1 = vshrl.u32 %v256_v0, 7  ;;  %2231 = vmatpush3.msk.msra.mxu0 %vm289_vm0, %v275_v2  ;;  %2238 = vmatprep.subr.msk.mxu1 %vm289_vm0, %v274_v7  ;;  %s3341_s28 = sld [smem:[#allocation40_spill]]  ;;  %v2061_v29 = vld [vmem:[#allocation7] ss:$0 sm:$0xff]  ;;  %v873_v62 = vld [vmem:[%s3304_s10 + $0x18] sm:$0xff]  ;;  %v872_v63 = vld [vmem:[%s3304_s10 + $0x10] sm:$0xff] }
  0xbd   :  { %2239 = vmatpush3.msk.msra.mxu1 %vm289_vm0, %v274_v7  ;;  %s3342_s29 = sld [smem:[#allocation39_spill]]  ;;  %v871_v2 = vld [vmem:[%s3304_s10 + $0x8] sm:$0xff] }
  0xbe   :  { %vm263_vm2 = vcmp.lt.s32.totalorder %v2955_v1, 1  ;;  %vm268_vm3 = vcmp.ge.s32.totalorder %v2955_v1, 1  ;;  %s3343_s9 = sld [smem:[#allocation44_spill]]  ;;  %vm855_vm15 = vcmp.lt.s32.totalorder %v2955_v1, 2 }
  0xc1   :  { %v2960_v3 = vld [vmem:[%s3340_s7] sm:$0xff]  ;;  %v2965_v4 = vld [vmem:[%s3340_s7 + $0x8] sm:$0xff]  ;;  %v2977_v8 = vld [vmem:[%s3340_s7 + $0x10] sm:$0xff] }
  0xc2   :  { %v259_v5 = vrot.slane %v2960_v3, 7  ;;  %2232 = vmatprep.mubr.msk.f32.mxu0 %vm276_vm1, %v2960_v3  ;;  %v261_v6 = vrot.slane %v2965_v4, 7  ;;  %v2982_v9 = vld [vmem:[%s3340_s7 + $0x18] sm:$0xff]  ;;  %v260_v10 = vrot.slane %v2977_v8, 7  ;;  %v518_v19 = vld [vmem:[%s3341_s28 + $0x10] sm:$0xff]  ;;  %v517_v21 = vld [vmem:[%s3341_s28 + $0x8] sm:$0xff] }
  0xc3   :  { %v262_v11 = vrot.slane %v2982_v9, 7  ;;  %2233 = vmatmul.mubr.msk.f32.vlgmr.msra.gmra.mxu0 %vm276_vm1, %v2965_v4  ;;  %v519_v18 = vld [vmem:[%s3341_s28 + $0x18] sm:$0xff]  ;;  %v514_v22 = vld [vmem:[%s3342_s29 + $0x10] sm:$0xff]  ;;  %v516_v23 = vld [vmem:[%s3341_s28] sm:$0xff] }
  0xc4   :  { %v266_v12 = vsel %vm263_vm2, %v261_v6, %v259_v5  ;;  %v264_v13 = vsel %vm263_vm2, %v259_v5, %v261_v6  ;;  %2235 = vmatprep.mubr.msk.f32.mxu0 %vm276_vm1, %v2977_v8  ;;  %2246 = vmatprep.subr.mxu0 %v519_v18  ;;  %v515_v20 = vld [vmem:[%s3342_s29 + $0x18] sm:$0xff]  ;;  %v513_v24 = vld [vmem:[%s3342_s29 + $0x8] sm:$0xff]  ;;  %v512_v26 = vld [vmem:[%s3342_s29] sm:$0xff] }
  0xc5   :  { %v270_v14 = vsel %vm268_vm3, %v266_v12, 0.0  ;;  %v267_v15 = vsel %vm263_vm2, %v262_v11, %v260_v10  ;;  %v265_v17 = vsel %vm263_vm2, %v260_v10, %v262_v11  ;;  %2247 = vmatpush3.msra.mxu0 %v519_v18  ;;  %2260 = vmatprep.subr.mxu1 %v515_v20  ;;  %v869_v0 = vld [vmem:[%s3343_s9 + $0x18] sm:$0xff]  ;;  %v867_v5 = vld [vmem:[%s3343_s9 + $0x8] sm:$0xff]  ;;  %v866_v6 = vld [vmem:[%s3343_s9] sm:$0xff] }
  0xc6   :  { %2240 = vmatprep.mubr.msk.f32.mxu1 %vm276_vm1, %v270_v14  ;;  %v272_v16 = vsel %vm268_vm3, %v267_v15, 0.0  ;;  %2248 = vmatprep.subr.mxu0 %v518_v19  ;;  %v2070_v10 = vld [vmem:[#allocation8] ss:$0 sm:$0xff] }
  0xc7   :  { %2241 = vmatmul.mubr.msk.f32.vlgmr.msra.gmra.mxu1 %vm276_vm1, %v264_v13  ;;  %2236 = vmatmul.mubr.msk.f32.gmra.mxu0 %vm276_vm1, %v2982_v9 }
  0xc8   :  { %2243 = vmatprep.mubr.msk.f32.mxu1 %vm276_vm1, %v272_v16  ;;  %2249 = vmatpush3.msra.mxu0 %v518_v19 }
  0xc9   :  { %2250 = vmatprep.subr.mxu0 %v517_v21  ;;  %2261 = vmatpush3.msra.mxu1 %v515_v20 }
  0xca   :  { %2251 = vmatpush3.msra.mxu0 %v517_v21  ;;  %2262 = vmatprep.subr.mxu1 %v514_v22 }
  0xcb   :  { %2244 = vmatmul.mubr.msk.f32.gmra.mxu1 %vm276_vm1, %v265_v17  ;;  %2252 = vmatprep.subr.mxu0 %v516_v23  ;;  %v2071_v17 = vld [vmem:[#allocation11] ss:$0 sm:$0xff] }
  0xcc   :  { %2263 = vmatpush3.msra.mxu1 %v514_v22  ;;  %2253 = vmatpush3.msra.mxu0 %v516_v23 }
  0xcd   :  { %2264 = vmatprep.subr.mxu1 %v513_v24  ;;  %2274 = vmatprep.subr.msk.mxu0 %vm289_vm0, %v737_v25 }
  0xce   :  { %2265 = vmatpush3.msra.mxu1 %v513_v24 }
  0xcf   :  { %2266 = vmatprep.subr.mxu1 %v512_v26 }
  0xd0   :  { %2267 = vmatpush3.msra.mxu1 %v512_v26 }
  0xd1   :  { %2282 = vmatprep.subr.mxu1 %v873_v62 }
 0x183   :  { %v2234_v27 = vpop.f32.mrf.mxu0 }
 0x185   :  { %v359_v28 = vpop.f32.mrf.mxu0 }
 0x187   :  { %v2242_v30 = vpop.f32.mrf.mxu1  ;;  %v2237_v32 = vpop.f32.mrf.mxu0 }
 0x188   :  { %v465_v31 = vadd.f32 %v2242_v30, %v2234_v27 }
 0x189   :  { %v459_v33 = vpop.f32.mrf.mxu1  ;;  %v369_v40 = vpop.f32.mrf.mxu0 }
 0x18a   :  { %v485_v34 = vadd.f32 %v2061_v29, %v465_v31  ;;  %v460_v35 = vadd.f32 %v459_v33, %v359_v28 }
 0x18b   :  { %v2245_v36 = vpop.f32.mrf.mxu1 }
 0x18c   :  { %vm489_vm4 = vcmp.ge.f32.partialorder %v485_v34, 0.0  ;;  %v493_v37 = vmul.f32 0.01, %v485_v34  ;;  %v484_v38 = vadd.f32 %v2061_v29, %v460_v35  ;;  %v475_v39 = vadd.f32 %v2245_v36, %v2237_v32 }
 0x18d   :  { %v469_v41 = vpop.f32.mrf.mxu1 }
 0x18e   :  { %v497_v42 = vsel %vm489_vm4, %v485_v34, %v493_v37  ;;  %v492_v43 = vmul.f32 0.01, %v484_v38  ;;  %v487_v44 = vadd.f32 %v2061_v29, %v475_v39  ;;  %v470_v45 = vadd.f32 %v469_v41, %v369_v40 }
 0x18f   :  { %vm488_vm6 = vcmp.ge.f32.partialorder %v484_v38, 0.0  ;;  %v502_v49 = vrot.slane %v497_v42, 7 }
 0x190   :  { %v495_v46 = vmul.f32 0.01, %v487_v44  ;;  %v486_v47 = vadd.f32 %v2061_v29, %v470_v45  ;;  %v496_v48 = vsel %vm488_vm6, %v484_v38, %v492_v43  ;;  %vm491_vm7 = vcmp.ge.f32.partialorder %v487_v44, 0.0 }
 0x191   :  { %v500_v50 = vrot.slane %v496_v48, 7  ;;  %2254 = vmatprep.mubr.msk.f32.mxu0 %vm520_vm5, %v496_v48 }
 0x192   :  { %v494_v51 = vmul.f32 0.01, %v486_v47  ;;  %2255 = vmatmul.mubr.msk.f32.vlgmr.msra.gmra.mxu0 %vm520_vm5, %v497_v42  ;;  %vm490_vm8 = vcmp.ge.f32.partialorder %v486_v47, 0.0  ;;  %v499_v52 = vsel %vm491_vm7, %v487_v44, %v495_v46 }
 0x193   :  { %2275 = vmatpush3.msk.msra.mxu0 %vm289_vm0, %v737_v25  ;;  %v506_v53 = vsel %vm263_vm2, %v502_v49, %v500_v50  ;;  %v503_v57 = vrot.slane %v499_v52, 7  ;;  %v504_v58 = vsel %vm263_vm2, %v500_v50, %v502_v49 }
 0x194   :  { %v498_v54 = vsel %vm490_vm8, %v486_v47, %v494_v51  ;;  %v508_v55 = vsel %vm268_vm3, %v506_v53, 0.0  ;;  %2296 = vmatprep.subr.mxu0 %v869_v0 }
 0x195   :  { %v501_v56 = vrot.slane %v498_v54, 7  ;;  %2257 = vmatprep.mubr.msk.f32.mxu0 %vm520_vm5, %v498_v54  ;;  %2268 = vmatprep.mubr.msk.f32.mxu1 %vm520_vm5, %v508_v55 }
 0x196   :  { %2258 = vmatmul.mubr.msk.f32.gmra.mxu0 %vm520_vm5, %v499_v52  ;;  %2269 = vmatmul.mubr.msk.f32.vlgmr.msra.gmra.mxu1 %vm520_vm5, %v504_v58 }
 0x197   :  { %v507_v59 = vsel %vm263_vm2, %v503_v57, %v501_v56  ;;  %2276 = vmatprep.mubr.msk.f32.mxu0 %vm276_vm1, %v2960_v3  ;;  %v505_v61 = vsel %vm263_vm2, %v501_v56, %v503_v57  ;;  %2283 = vmatpush3.msra.mxu1 %v873_v62  ;;  %v868_v3 = vld [vmem:[%s3343_s9 + $0x10] sm:$0xff] }
 0x198   :  { %v510_v60 = vsel %vm268_vm3, %v507_v59, 0.0  ;;  %2284 = vmatprep.subr.mxu1 %v872_v63 }
 0x199   :  { %2271 = vmatprep.mubr.msk.f32.mxu1 %vm520_vm5, %v510_v60  ;;  %2285 = vmatpush3.msra.mxu1 %v872_v63  ;;  %v1109_v63 = vld [vmem:[%s3307_s13 + $0x18] sm:$0xff] }
 0x19a   :  { %2272 = vmatmul.mubr.msk.f32.gmra.mxu1 %vm520_vm5, %v505_v61  ;;  %2277 = vmatmul.mubr.msk.f32.vlgmr.msra.gmra.mxu0 %vm276_vm1, %v2965_v4  ;;  %v870_v4 = vld [vmem:[%s3304_s10] sm:$0xff] }
 0x19b   :  { %2279 = vmatprep.mubr.msk.f32.mxu0 %vm276_vm1, %v2977_v8  ;;  %2286 = vmatprep.subr.mxu1 %v871_v2 }
 0x19c   :  { %2297 = vmatpush3.msra.mxu0 %v869_v0  ;;  %2287 = vmatpush3.msra.mxu1 %v871_v2  ;;  %v1108_v0 = vld [vmem:[%s3307_s13 + $0x10] sm:$0xff]  ;;  %v1105_v2 = vld [vmem:[%s3306_s12 + $0x18] sm:$0xff] }
 0x19d   :  { %2298 = vmatprep.subr.mxu0 %v868_v3  ;;  %2288 = vmatprep.subr.mxu1 %v870_v4 }
 0x19e   :  { %2280 = vmatmul.mubr.msk.f32.gmra.mxu0 %vm276_vm1, %v2982_v9  ;;  %2289 = vmatpush3.msra.mxu1 %v870_v4  ;;  %vm860_vm1 = vcmp.ge.s32.totalorder %v2955_v1, 2  ;;  %v1104_v4 = vld [vmem:[%s3306_s12 + $0x10] sm:$0xff] }
 0x19f   :  { %2299 = vmatpush3.msra.mxu0 %v868_v3  ;;  %2310 = vmatprep.subr.mxu1 %v1109_v63  ;;  %v1107_v3 = vld [vmem:[%s3307_s13 + $0x8] sm:$0xff] }
 0x1a0   :  { %2300 = vmatprep.subr.mxu0 %v867_v5 }
 0x1a1   :  { %2301 = vmatpush3.msra.mxu0 %v867_v5  ;;  %v1106_v5 = vld [vmem:[%s3307_s13] sm:$0xff] }
 0x1a2   :  { %2302 = vmatprep.subr.mxu0 %v866_v6 }
 0x1a3   :  { %2303 = vmatpush3.msra.mxu0 %v866_v6  ;;  %v1103_v6 = vld [vmem:[%s3306_s12 + $0x8] sm:$0xff] }
 0x1a4   :  { %2324 = vmatprep.subr.mxu0 %v1105_v2 }
 0x252   :  { %v2256_v7 = vpop.f32.mrf.mxu0 }
 0x254   :  { %v599_v8 = vpop.f32.mrf.mxu0 }
 0x256   :  { %v2259_v9 = vpop.f32.mrf.mxu0  ;;  %v2270_v11 = vpop.f32.mrf.mxu1 }
 0x257   :  { %v702_v12 = vadd.f32 %v2270_v11, %v2256_v7  ;;  %v1329_v7 = vld [vmem:[#allocation16 + $0x18] sm:$0xff] }
 0x258   :  { %v609_v13 = vpop.f32.mrf.mxu0  ;;  %v696_v14 = vpop.f32.mrf.mxu1  ;;  %v2085_v11 = vld [vmem:[#allocation13] ss:$0 sm:$0xff] }
 0x259   :  { %v722_v15 = vadd.f32 %v2070_v10, %v702_v12  ;;  %v697_v16 = vadd.f32 %v696_v14, %v599_v8  ;;  %v1102_v8 = vld [vmem:[%s3306_s12] sm:$0xff] }
 0x25a   :  { %v2273_v18 = vpop.f32.mrf.mxu1  ;;  %v2278_v19 = vpop.f32.mrf.mxu0 }
 0x25b   :  { %v730_v20 = vmul.f32 0.01, %v722_v15  ;;  %v721_v21 = vadd.f32 %v2070_v10, %v697_v16  ;;  %v712_v22 = vadd.f32 %v2273_v18, %v2259_v9  ;;  %vm726_vm9 = vcmp.ge.f32.partialorder %v722_v15, 0.0 }
 0x25c   :  { %v819_v23 = vadd.f32 %v2278_v19, %v2071_v17  ;;  %v706_v24 = vpop.f32.mrf.mxu1  ;;  %v813_v25 = vpop.f32.mrf.mxu0 }
 0x25d   :  { %v729_v26 = vmul.f32 0.01, %v721_v21  ;;  %v724_v27 = vadd.f32 %v2070_v10, %v712_v22  ;;  %v734_v28 = vsel %vm726_vm9, %v722_v15, %v730_v20  ;;  %v707_v29 = vadd.f32 %v706_v24, %v609_v13 }
 0x25e   :  { %v833_v30 = vadd.f32 %v819_v23, %v734_v28  ;;  %vm725_vm10 = vcmp.ge.f32.partialorder %v721_v21, 0.0  ;;  %v814_v31 = vadd.f32 %v2071_v17, %v813_v25  ;;  %v2281_v32 = vpop.f32.mrf.mxu0 }
 0x25f   :  { %v732_v33 = vmul.f32 0.01, %v724_v27  ;;  %v723_v34 = vadd.f32 %v2070_v10, %v707_v29  ;;  %v733_v35 = vsel %vm725_vm10, %v721_v21, %v729_v26  ;;  %vm728_vm11 = vcmp.ge.f32.partialorder %v724_v27, 0.0 }
 0x260   :  { %vm837_vm12 = vcmp.ge.f32.partialorder %v833_v30, 0.0  ;;  %v841_v36 = vmul.f32 0.01, %v833_v30  ;;  %v832_v37 = vadd.f32 %v814_v31, %v733_v35  ;;  %v829_v38 = vadd.f32 %v2281_v32, %v2071_v17  ;;  %v823_v39 = vpop.f32.mrf.mxu0 }
 0x261   :  { %v731_v40 = vmul.f32 0.01, %v723_v34  ;;  %v736_v41 = vsel %vm728_vm11, %v724_v27, %v732_v33  ;;  %vm727_vm13 = vcmp.ge.f32.partialorder %v723_v34, 0.0  ;;  %v824_v42 = vadd.f32 %v2071_v17, %v823_v39  ;;  %v1328_v33 = vld [vmem:[#allocation16 + $0x10] sm:$0xff]  ;;  %v1327_v39 = vld [vmem:[#allocation16 + $0x8] sm:$0xff] }
 0x262   :  { %v3089_v43 = vsel %vm837_vm12, %v833_v30, %v841_v36  ;;  %v840_v44 = vmul.f32 0.01, %v832_v37  ;;  %v835_v45 = vadd.f32 %v829_v38, %v736_v41  ;;  %vm836_vm14 = vcmp.ge.f32.partialorder %v832_v37, 0.0 }
 0x263   :  { %v735_v46 = vsel %vm727_vm13, %v723_v34, %v731_v40  ;;  %v853_v51 = vrot.slane %v3089_v43, 6 }
 0x264   :  { %v843_v47 = vmul.f32 0.01, %v835_v45  ;;  %v834_v48 = vadd.f32 %v824_v42, %v735_v46  ;;  %v3092_v49 = vsel %vm836_vm14, %v832_v37, %v840_v44  ;;  %vm839_vm0 = vcmp.ge.f32.partialorder %v835_v45, 0.0  ;;  %v1326_v44 = vld [vmem:[#allocation16] sm:$0xff] }
 0x265   :  { %v851_v50 = vrot.slane %v3092_v49, 6  ;;  %2290 = vmatprep.mubr.msk.f32.mxu1 %vm520_vm5, %v3092_v49  ;;  %vm1444_vm14 = vcmp.lt.s32.totalorder %v2955_v1, 4 }
 0x266   :  { %v842_v52 = vmul.f32 0.01, %v834_v48  ;;  %2291 = vmatmul.mubr.msk.f32.vlgmr.msra.gmra.mxu1 %vm520_vm5, %v3089_v43  ;;  %vm838_vm2 = vcmp.ge.f32.partialorder %v834_v48, 0.0  ;;  %v3101_v53 = vsel %vm839_vm0, %v835_v45, %v843_v47  ;;  %vm1449_vm0 = vcmp.ge.s32.totalorder %v2955_v1, 4 }
 0x267   :  { %v858_v54 = vsel %vm855_vm15, %v853_v51, %v851_v50  ;;  %v854_v58 = vrot.slane %v3101_v53, 6  ;;  %v856_v59 = vsel %vm855_vm15, %v851_v50, %v853_v51  ;;  %2311 = vmatpush3.msra.mxu1 %v1109_v63  ;;  %v1460_v50 = vld [vmem:[%s3312_s18 + $0x8] sm:$0xff]  ;;  %v1457_v51 = vld [vmem:[%s3311_s17 + $0x10] sm:$0xff] }
 0x268   :  { %v3105_v55 = vsel %vm838_vm2, %v834_v48, %v842_v52  ;;  %v862_v56 = vsel %vm860_vm1, %v858_v54, 0.0  ;;  %2312 = vmatprep.subr.mxu1 %v1108_v0  ;;  %v1462_v48 = vld [vmem:[%s3312_s18 + $0x18] sm:$0xff]  ;;  %v1459_v52 = vld [vmem:[%s3312_s18] sm:$0xff] }
 0x269   :  { %v852_v57 = vrot.slane %v3105_v55, 6  ;;  %2293 = vmatprep.mubr.msk.f32.mxu1 %vm520_vm5, %v3105_v55  ;;  %2304 = vmatprep.mubr.msk.f32.mxu0 %vm520_vm5, %v862_v56  ;;  %v1455_v54 = vld [vmem:[%s3311_s17] sm:$0xff] }
 0x26a   :  { %2294 = vmatmul.mubr.msk.f32.gmra.mxu1 %vm520_vm5, %v3101_v53  ;;  %2305 = vmatmul.mubr.msk.f32.vlgmr.msra.gmra.mxu0 %vm520_vm5, %v856_v59 }
 0x26b   :  { %v859_v60 = vsel %vm855_vm15, %v854_v58, %v852_v57  ;;  %v857_v62 = vsel %vm855_vm15, %v852_v57, %v854_v58  ;;  %2313 = vmatpush3.msra.mxu1 %v1108_v0  ;;  %2325 = vmatpush3.msra.mxu0 %v1105_v2  ;;  %v2094_v57 = vld [vmem:[#allocation14] ss:$0 sm:$0xff]  ;;  %v2095_v2 = vld [vmem:[#allocation17] ss:$0 sm:$0xff] }
 0x26c   :  { %v864_v61 = vsel %vm860_vm1, %v859_v60, 0.0  ;;  %2314 = vmatprep.subr.mxu1 %v1107_v3  ;;  %2326 = vmatprep.subr.mxu0 %v1104_v4 }
 0x26d   :  { %2307 = vmatprep.mubr.msk.f32.mxu0 %vm520_vm5, %v864_v61  ;;  %2315 = vmatpush3.msra.mxu1 %v1107_v3 }
 0x26e   :  { %2308 = vmatmul.mubr.msk.f32.gmra.mxu0 %vm520_vm5, %v857_v62  ;;  %2316 = vmatprep.subr.mxu1 %v1106_v5 }
 0x26f   :  { %2327 = vmatpush3.msra.mxu0 %v1104_v4  ;;  %2317 = vmatpush3.msra.mxu1 %v1106_v5 }
 0x270   :  { %2328 = vmatprep.subr.mxu0 %v1103_v6  ;;  %2338 = vmatprep.subr.mxu1 %v1329_v7 }
 0x271   :  { %2329 = vmatpush3.msra.mxu0 %v1103_v6 }
 0x272   :  { %2330 = vmatprep.subr.mxu0 %v1102_v8 }
 0x273   :  { %2331 = vmatpush3.msra.mxu0 %v1102_v8 }
 0x274   :  { %2352 = vmatprep.subr.mxu0 %v1462_v48 }
 0x326   :  { %v2292_v9 = vpop.f32.mrf.mxu1 }
 0x328   :  { %v952_v10 = vpop.f32.mrf.mxu1 }
 0x32a   :  { %v2306_v12 = vpop.f32.mrf.mxu0  ;;  %v2295_v14 = vpop.f32.mrf.mxu1 }
 0x32b   :  { %v1055_v13 = vadd.f32 %v2306_v12, %v2292_v9 }
 0x32c   :  { %v1049_v15 = vpop.f32.mrf.mxu0  ;;  %v962_v22 = vpop.f32.mrf.mxu1 }
 0x32d   :  { %v1075_v16 = vadd.f32 %v2085_v11, %v1055_v13  ;;  %v1050_v17 = vadd.f32 %v1049_v15, %v952_v10 }
 0x32e   :  { %v2309_v18 = vpop.f32.mrf.mxu0 }
 0x32f   :  { %vm1079_vm3 = vcmp.ge.f32.partialorder %v1075_v16, 0.0  ;;  %v1083_v19 = vmul.f32 0.01, %v1075_v16  ;;  %v1074_v20 = vadd.f32 %v2085_v11, %v1050_v17  ;;  %v1065_v21 = vadd.f32 %v2309_v18, %v2295_v14 }
 0x330   :  { %v1059_v23 = vpop.f32.mrf.mxu0 }
 0x331   :  { %v1087_v24 = vsel %vm1079_vm3, %v1075_v16, %v1083_v19  ;;  %v1082_v25 = vmul.f32 0.01, %v1074_v20  ;;  %v1077_v26 = vadd.f32 %v2085_v11, %v1065_v21  ;;  %v1060_v27 = vadd.f32 %v1059_v23, %v962_v22 }
 0x332   :  { %vm1078_vm4 = vcmp.ge.f32.partialorder %v1074_v20, 0.0  ;;  %v1092_v31 = vrot.slane %v1087_v24, 6  ;;  %vm1695_vm3 = vcmask 130048  }
 0x333   :  { %v1085_v28 = vmul.f32 0.01, %v1077_v26  ;;  %v1076_v29 = vadd.f32 %v2085_v11, %v1060_v27  ;;  %v1086_v30 = vsel %vm1078_vm4, %v1074_v20, %v1082_v25  ;;  %vm1081_vm6 = vcmp.ge.f32.partialorder %v1077_v26, 0.0 }
 0x334   :  { %v1090_v32 = vrot.slane %v1086_v30, 6  ;;  %2318 = vmatprep.mubr.msk.f32.mxu1 %vm520_vm5, %v1086_v30 }
 0x335   :  { %v1084_v34 = vmul.f32 0.01, %v1076_v29  ;;  %2319 = vmatmul.mubr.msk.f32.vlgmr.msra.gmra.mxu1 %vm520_vm5, %v1087_v24  ;;  %vm1080_vm7 = vcmp.ge.f32.partialorder %v1076_v29, 0.0  ;;  %v1089_v35 = vsel %vm1081_vm6, %v1077_v26, %v1085_v28 }
 0x336   :  { %2339 = vmatpush3.msra.mxu1 %v1329_v7  ;;  %v1096_v36 = vsel %vm855_vm15, %v1092_v31, %v1090_v32  ;;  %v1093_v41 = vrot.slane %v1089_v35, 6  ;;  %v1094_v42 = vsel %vm855_vm15, %v1090_v32, %v1092_v31 }
 0x337   :  { %2340 = vmatprep.subr.mxu1 %v1328_v33  ;;  %v1088_v37 = vsel %vm1080_vm7, %v1076_v29, %v1084_v34  ;;  %v1098_v38 = vsel %vm860_vm1, %v1096_v36, 0.0 }
 0x338   :  { %v1091_v40 = vrot.slane %v1088_v37, 6  ;;  %2321 = vmatprep.mubr.msk.f32.mxu1 %vm520_vm5, %v1088_v37  ;;  %2332 = vmatprep.mubr.msk.f32.mxu0 %vm520_vm5, %v1098_v38 }
 0x339   :  { %2341 = vmatpush3.msra.mxu1 %v1328_v33  ;;  %2333 = vmatmul.mubr.msk.f32.vlgmr.msra.gmra.mxu0 %vm520_vm5, %v1094_v42 }
 0x33a   :  { %2322 = vmatmul.mubr.msk.f32.gmra.mxu1 %vm520_vm5, %v1089_v35  ;;  %2342 = vmatprep.subr.mxu1 %v1327_v39  ;;  %v1097_v45 = vsel %vm855_vm15, %v1093_v41, %v1091_v40  ;;  %v1095_v47 = vsel %vm855_vm15, %v1091_v40, %v1093_v41 }
 0x33b   :  { %2343 = vmatpush3.msra.mxu1 %v1327_v39  ;;  %2346 = vmatprep.mubr.msk.f32.mxu1 %vm520_vm5, %v3092_v49  ;;  %v1100_v46 = vsel %vm860_vm1, %v1097_v45, 0.0  ;;  %v1461_v49 = vld [vmem:[%s3312_s18 + $0x10] sm:$0xff] }
 0x33c   :  { %2344 = vmatprep.subr.mxu1 %v1326_v44  ;;  %2335 = vmatprep.mubr.msk.f32.mxu0 %vm520_vm5, %v1100_v46 }
 0x33d   :  { %2345 = vmatpush3.msra.mxu1 %v1326_v44  ;;  %2336 = vmatmul.mubr.msk.f32.gmra.mxu0 %vm520_vm5, %v1095_v47 }
 0x33e   :  { %2347 = vmatmul.mubr.msk.f32.vlgmr.msra.gmra.mxu1 %vm520_vm5, %v3089_v43  ;;  %2353 = vmatpush3.msra.mxu0 %v1462_v48  ;;  %v1458_v43 = vld [vmem:[%s3311_s17 + $0x18] sm:$0xff] }
 0x33f   :  { %2349 = vmatprep.mubr.msk.f32.mxu1 %vm520_vm5, %v3105_v55  ;;  %2354 = vmatprep.subr.mxu0 %v1461_v49 }
 0x340   :  { %2355 = vmatpush3.msra.mxu0 %v1461_v49  ;;  %2366 = vmatprep.subr.mxu1 %v1458_v43  ;;  %v1694_v49 = vld [vmem:[#allocation22 + $0x8] sm:$0xff] }
 0x341   :  { %2356 = vmatprep.subr.mxu0 %v1460_v50  ;;  %2367 = vmatpush3.msra.mxu1 %v1458_v43  ;;  %v1693_v43 = vld [vmem:[#allocation22] sm:$0xff] }
 0x342   :  { %2350 = vmatmul.mubr.msk.f32.gmra.mxu1 %vm520_vm5, %v3101_v53  ;;  %2357 = vmatpush3.msra.mxu0 %v1460_v50  ;;  %v1456_v53 = vld [vmem:[%s3311_s17 + $0x8] sm:$0xff] }
 0x343   :  { %2368 = vmatprep.subr.mxu1 %v1457_v51  ;;  %2358 = vmatprep.subr.mxu0 %v1459_v52  ;;  %v1692_v50 = vld [vmem:[#allocation20 + $0x8] sm:$0xff] }
 0x344   :  { %2369 = vmatpush3.msra.mxu1 %v1457_v51  ;;  %2359 = vmatpush3.msra.mxu0 %v1459_v52  ;;  %v1691_v51 = vld [vmem:[#allocation20] sm:$0xff] }
 0x345   :  { %2370 = vmatprep.subr.mxu1 %v1456_v53  ;;  %2380 = vmatprep.subr.mxu0 %v1694_v49  ;;  %v1915_v52 = vld [vmem:[%s3317_s23 + $0x18] sm:$0xff] }
 0x346   :  { %2371 = vmatpush3.msra.mxu1 %v1456_v53 }
 0x347   :  { %2372 = vmatprep.subr.mxu1 %v1455_v54 }
 0x348   :  { %2373 = vmatpush3.msra.mxu1 %v1455_v54 }
 0x349   :  { %2390 = vmatprep.subr.mxu1 %v1692_v50 }
 0x3f5   :  { %v2320_v55 = vpop.f32.mrf.mxu1 }
 0x3f7   :  { %v1188_v56 = vpop.f32.mrf.mxu1 }
 0x3f9   :  { %v2334_v58 = vpop.f32.mrf.mxu0 }
 0x3fa   :  { %v2323_v59 = vpop.f32.mrf.mxu1  ;;  %v1291_v60 = vadd.f32 %v2334_v58, %v2320_v55  ;;  %v2108_v55 = vld [vmem:[#allocation19] ss:$0 sm:$0xff] }
 0x3fb   :  { %v1285_v61 = vpop.f32.mrf.mxu0 }
 0x3fc   :  { %v1311_v62 = vadd.f32 %v2094_v57, %v1291_v60  ;;  %v1198_v63 = vpop.f32.mrf.mxu1  ;;  %v1286_v0 = vadd.f32 %v1285_v61, %v1188_v56 }
 0x3fd   :  { %v2337_v3 = vpop.f32.mrf.mxu0 }
 0x3fe   :  { %v1319_v4 = vmul.f32 0.01, %v1311_v62  ;;  %v1310_v5 = vadd.f32 %v2094_v57, %v1286_v0  ;;  %v1301_v6 = vadd.f32 %v2337_v3, %v2323_v59  ;;  %vm1315_vm8 = vcmp.ge.f32.partialorder %v1311_v62, 0.0  ;;  %v2348_v7 = vpop.f32.mrf.mxu1 }
 0x3ff   :  { %v1408_v8 = vadd.f32 %v2348_v7, %v2095_v2  ;;  %v1295_v9 = vpop.f32.mrf.mxu0 }
 0x400   :  { %v1318_v10 = vmul.f32 0.01, %v1310_v5  ;;  %v1313_v11 = vadd.f32 %v2094_v57, %v1301_v6  ;;  %v1323_v12 = vsel %vm1315_vm8, %v1311_v62, %v1319_v4  ;;  %v1296_v13 = vadd.f32 %v1295_v9, %v1198_v63  ;;  %v1402_v14 = vpop.f32.mrf.mxu1 }
 0x401   :  { %v1422_v15 = vadd.f32 %v1408_v8, %v1323_v12  ;;  %vm1314_vm9 = vcmp.ge.f32.partialorder %v1310_v5, 0.0  ;;  %v1403_v16 = vadd.f32 %v2095_v2, %v1402_v14  ;;  %v1914_v14 = vld [vmem:[%s3317_s23 + $0x10] sm:$0xff] }
 0x402   :  { %v1321_v17 = vmul.f32 0.01, %v1313_v11  ;;  %v1312_v18 = vadd.f32 %v2094_v57, %v1296_v13  ;;  %v1322_v19 = vsel %vm1314_vm9, %v1310_v5, %v1318_v10  ;;  %vm1317_vm10 = vcmp.ge.f32.partialorder %v1313_v11, 0.0  ;;  %v2351_v20 = vpop.f32.mrf.mxu1 }
 0x403   :  { %vm1426_vm11 = vcmp.ge.f32.partialorder %v1422_v15, 0.0  ;;  %v1430_v21 = vmul.f32 0.01, %v1422_v15  ;;  %v1421_v22 = vadd.f32 %v1403_v16, %v1322_v19  ;;  %v1418_v23 = vadd.f32 %v2351_v20, %v2095_v2  ;;  %v1913_v20 = vld [vmem:[%s3317_s23 + $0x8] sm:$0xff] }
 0x404   :  { %v1320_v24 = vmul.f32 0.01, %v1312_v18  ;;  %v1325_v25 = vsel %vm1317_vm10, %v1313_v11, %v1321_v17  ;;  %vm1316_vm12 = vcmp.ge.f32.partialorder %v1312_v18, 0.0  ;;  %v1412_v26 = vpop.f32.mrf.mxu1 }
 0x405   :  { %v3203_v27 = vsel %vm1426_vm11, %v1422_v15, %v1430_v21  ;;  %v1429_v28 = vmul.f32 0.01, %v1421_v22  ;;  %v1424_v29 = vadd.f32 %v1418_v23, %v1325_v25  ;;  %v1413_v30 = vadd.f32 %v2095_v2, %v1412_v26 }
 0x406   :  { %v1324_v31 = vsel %vm1316_vm12, %v1312_v18, %v1320_v24  ;;  %vm1425_vm13 = vcmp.ge.f32.partialorder %v1421_v22, 0.0  ;;  %v1442_v36 = vrot.slane %v3203_v27, 4  ;;  %v1912_v24 = vld [vmem:[%s3317_s23] sm:$0xff] }
 0x407   :  { %v1432_v32 = vmul.f32 0.01, %v1424_v29  ;;  %v1423_v33 = vadd.f32 %v1413_v30, %v1324_v31  ;;  %v3206_v34 = vsel %vm1425_vm13, %v1421_v22, %v1429_v28  ;;  %vm1428_vm15 = vcmp.ge.f32.partialorder %v1424_v29, 0.0  ;;  %v2117_v31 = vld [vmem:[#allocation23] ss:$0 sm:$0xff] }
 0x408   :  { %v1440_v35 = vrot.slane %v3206_v34, 4  ;;  %2360 = vmatprep.mubr.msk.f32.mxu0 %vm520_vm5, %v3206_v34 }
 0x409   :  { %v1431_v37 = vmul.f32 0.01, %v1423_v33  ;;  %2361 = vmatmul.mubr.msk.f32.vlgmr.msra.gmra.mxu0 %vm520_vm5, %v3203_v27  ;;  %vm1427_vm1 = vcmp.ge.f32.partialorder %v1423_v33, 0.0  ;;  %v3215_v38 = vsel %vm1428_vm15, %v1424_v29, %v1432_v32 }
 0x40a   :  { %v1447_v39 = vsel %vm1444_vm14, %v1442_v36, %v1440_v35  ;;  %v1443_v44 = vrot.slane %v3215_v38, 4  ;;  %v1445_v45 = vsel %vm1444_vm14, %v1440_v35, %v1442_v36  ;;  %2381 = vmatpush3.msra.mxu0 %v1694_v49 }
 0x40b   :  { %v3219_v40 = vsel %vm1427_vm1, %v1423_v33, %v1431_v37  ;;  %v1451_v41 = vsel %vm1449_vm0, %v1447_v39, 0.0  ;;  %2382 = vmatprep.subr.mxu0 %v1693_v43 }
 0x40c   :  { %v1441_v42 = vrot.slane %v3219_v40, 4  ;;  %2363 = vmatprep.mubr.msk.f32.mxu0 %vm520_vm5, %v3219_v40  ;;  %2374 = vmatprep.mubr.msk.f32.mxu1 %vm520_vm5, %v1451_v41 }
 0x40d   :  { %2364 = vmatmul.mubr.msk.f32.gmra.mxu0 %vm520_vm5, %v3215_v38  ;;  %2375 = vmatmul.mubr.msk.f32.vlgmr.msra.gmra.mxu1 %vm520_vm5, %v1445_v45 }
 0x40e   :  { %v1448_v46 = vsel %vm1444_vm14, %v1443_v44, %v1441_v42  ;;  %v1446_v48 = vsel %vm1444_vm14, %v1441_v42, %v1443_v44  ;;  %2383 = vmatpush3.msra.mxu0 %v1693_v43  ;;  %2391 = vmatpush3.msra.mxu1 %v1692_v50 }
 0x40f   :  { %v1453_v47 = vsel %vm1449_vm0, %v1448_v46, 0.0  ;;  %2400 = vmatprep.subr.mxu0 %v1915_v52  ;;  %2392 = vmatprep.subr.mxu1 %v1691_v51 }
 0x410   :  { %2377 = vmatprep.mubr.msk.f32.mxu1 %vm520_vm5, %v1453_v47  ;;  %2393 = vmatpush3.msra.mxu1 %v1691_v51 }
 0x411   :  { %2378 = vmatmul.mubr.msk.f32.gmra.mxu1 %vm520_vm5, %v1446_v48  ;;  %2414 = vmatprep.subr.mxu1 %v1915_v52 }
 0x4c9   :  { %v2362_v53 = vpop.f32.mrf.mxu0 }
 0x4cb   :  { %v1541_v54 = vpop.f32.mrf.mxu0 }
 0x4cd   :  { %v2376_v56 = vpop.f32.mrf.mxu1  ;;  %v2365_v58 = vpop.f32.mrf.mxu0 }
 0x4ce   :  { %v1644_v57 = vadd.f32 %v2376_v56, %v2362_v53 }
 0x4cf   :  { %v1638_v59 = vpop.f32.mrf.mxu1  ;;  %v1551_v3 = vpop.f32.mrf.mxu0 }
 0x4d0   :  { %v1664_v60 = vadd.f32 %v2108_v55, %v1644_v57  ;;  %v1639_v61 = vadd.f32 %v1638_v59, %v1541_v54 }
 0x4d1   :  { %v2379_v62 = vpop.f32.mrf.mxu1 }
 0x4d2   :  { %vm1668_vm2 = vcmp.ge.f32.partialorder %v1664_v60, 0.0  ;;  %v1672_v63 = vmul.f32 0.01, %v1664_v60  ;;  %v1663_v0 = vadd.f32 %v2108_v55, %v1639_v61  ;;  %v1654_v2 = vadd.f32 %v2379_v62, %v2365_v58 }
 0x4d3   :  { %v1648_v4 = vpop.f32.mrf.mxu1 }
 0x4d4   :  { %v1676_v5 = vsel %vm1668_vm2, %v1664_v60, %v1672_v63  ;;  %v1671_v6 = vmul.f32 0.01, %v1663_v0  ;;  %v1666_v7 = vadd.f32 %v2108_v55, %v1654_v2  ;;  %v1649_v8 = vadd.f32 %v1648_v4, %v1551_v3 }
 0x4d5   :  { %vm1667_vm4 = vcmp.ge.f32.partialorder %v1663_v0, 0.0  ;;  %v1681_v12 = vrot.slane %v1676_v5, 4 }
 0x4d6   :  { %v1674_v9 = vmul.f32 0.01, %v1666_v7  ;;  %v1665_v10 = vadd.f32 %v2108_v55, %v1649_v8  ;;  %v1675_v11 = vsel %vm1667_vm4, %v1663_v0, %v1671_v6  ;;  %vm1670_vm6 = vcmp.ge.f32.partialorder %v1666_v7, 0.0 }
 0x4d7   :  { %v1679_v13 = vrot.slane %v1675_v11, 4  ;;  %2384 = vmatprep.mubr.msk.f32.mxu0 %vm1695_vm3, %v1675_v11 }
 0x4d8   :  { %v1673_v15 = vmul.f32 0.01, %v1665_v10  ;;  %2385 = vmatmul.mubr.msk.f32.vlgmr.msra.gmra.mxu0 %vm1695_vm3, %v1676_v5  ;;  %vm1669_vm7 = vcmp.ge.f32.partialorder %v1665_v10, 0.0  ;;  %v1678_v16 = vsel %vm1670_vm6, %v1666_v7, %v1674_v9 }
 0x4d9   :  { %2401 = vmatpush3.msra.mxu0 %v1915_v52  ;;  %v1685_v17 = vsel %vm1444_vm14, %v1681_v12, %v1679_v13  ;;  %v1682_v22 = vrot.slane %v1678_v16, 4  ;;  %v1683_v23 = vsel %vm1444_vm14, %v1679_v13, %v1681_v12 }
 0x4da   :  { %2402 = vmatprep.subr.mxu0 %v1914_v14  ;;  %v1677_v18 = vsel %vm1669_vm7, %v1665_v10, %v1673_v15  ;;  %v1687_v19 = vsel %vm1449_vm0, %v1685_v17, 0.0 }
 0x4db   :  { %v1680_v21 = vrot.slane %v1677_v18, 4  ;;  %2387 = vmatprep.mubr.msk.f32.mxu0 %vm1695_vm3, %v1677_v18  ;;  %2394 = vmatprep.mubr.msk.f32.mxu1 %vm1695_vm3, %v1687_v19 }
 0x4dc   :  { %2403 = vmatpush3.msra.mxu0 %v1914_v14  ;;  %2395 = vmatmul.mubr.msk.f32.vlgmr.msra.gmra.mxu1 %vm1695_vm3, %v1683_v23 }
 0x4dd   :  { %2388 = vmatmul.mubr.msk.f32.gmra.mxu0 %vm1695_vm3, %v1678_v16  ;;  %2404 = vmatprep.subr.mxu0 %v1913_v20  ;;  %v1686_v25 = vsel %vm1444_vm14, %v1682_v22, %v1680_v21  ;;  %v1684_v28 = vsel %vm1444_vm14, %v1680_v21, %v1682_v22 }
 0x4de   :  { %2418 = vmatpush3.msra.mxu1 %v1915_v52  ;;  %2405 = vmatpush3.msra.mxu0 %v1913_v20  ;;  %v1689_v26 = vsel %vm1449_vm0, %v1686_v25, 0.0 }
 0x4df   :  { %2408 = vmatprep.mubr.msk.f32.mxu0 %vm520_vm5, %v3206_v34  ;;  %2415 = vmatprep.subr.mxu1 %v1914_v14 }
 0x4e0   :  { %2406 = vmatprep.subr.mxu0 %v1912_v24  ;;  %2397 = vmatprep.mubr.msk.f32.mxu1 %vm1695_vm3, %v1689_v26 }
 0x4e1   :  { %2419 = vmatpush3.msra.mxu1 %v1914_v14  ;;  %2407 = vmatpush3.msra.mxu0 %v1912_v24 }
 0x4e2   :  { %2398 = vmatmul.mubr.msk.f32.gmra.mxu1 %vm1695_vm3, %v1684_v28  ;;  %2416 = vmatprep.subr.mxu1 %v1913_v20 }
 0x4e3   :  { %2409 = vmatmul.mubr.msk.f32.vlgmr.msra.gmra.mxu0 %vm520_vm5, %v3203_v27  ;;  %2420 = vmatpush3.msra.mxu1 %v1913_v20 }
 0x4e4   :  { %2411 = vmatprep.mubr.msk.f32.mxu1 %vm520_vm5, %v3219_v40  ;;  %2417 = vmatprep.subr.mxu1 %v1912_v24  ;;  %v2118_v40 = vld [vmem:[%s3318_s24] ss:$0 sm:$0xff]  ;;  %s2773_s24 = smov [#allocation25]  }
 0x4e5   :  { %2421 = vmatpush3.msra.mxu1 %v1912_v24  ;;  %s2032_s29 = sshll.u32 %s2773_s24, 4  ;;  %s2033_s29 = int_to_ptr.vmem [resolvable:$true] %s2032_s29 }
 0x4e6   :  { %2412 = vmatmul.mubr.msk.f32.vlgmr.msra.gmra.mxu1 %vm520_vm5, %v3215_v38  ;;  %s2719_s12 = scalar_lea.vmem %s2033_s29, 512  ;;  %p2724_p1 = scmp.lt.s32.totalorder %s2033_s29, %s2033_s29 }
 0x4e7   :  { %p2720_p0 = scmp.ne.s32.totalorder %s2033_s29, %s2719_s12  ;;  %p2725_p2 = scmp.lt.s32.totalorder %s2719_s12, %s2719_s12 }
 0x4e9   :  { %p2726_p3 = por %p2725_p2, %p2724_p1 }
 0x4eb   :  { %p2727_p4 = pnand %p2726_p3, %p2720_p0 }
 0x598   :  { %v2386_v29 = vpop.f32.mrf.mxu0 }
 0x59a   :  { %v1774_v30 = vpop.f32.mrf.mxu0 }
 0x59c   :  { %v2396_v1 = vpop.f32.mrf.mxu1 }
 0x59d   :  { %v2389_v32 = vpop.f32.mrf.mxu0  ;;  %v1877_v33 = vadd.f32 %v2396_v1, %v2386_v29 }
 0x59e   :  { %v1871_v34 = vpop.f32.mrf.mxu1 }
 0x59f   :  { %v1897_v35 = vadd.f32 %v2117_v31, %v1877_v33  ;;  %v1784_v36 = vpop.f32.mrf.mxu0  ;;  %v1872_v37 = vadd.f32 %v1871_v34, %v1774_v30 }
 0x5a1   :  { %v1905_v27 = vmul.f32 0.01, %v1897_v35  ;;  %v1896_v39 = vadd.f32 %v2117_v31, %v1872_v37  ;;  %vm1901_vm8 = vcmp.ge.f32.partialorder %v1897_v35, 0.0 }
 0x5a2   :  { %v2399_v41 = vpop.f32.mrf.mxu1 }
 0x5a3   :  { %v1904_v42 = vmul.f32 0.01, %v1896_v39  ;;  %v1887_v38 = vadd.f32 %v2399_v41, %v2389_v32  ;;  %v1909_v44 = vsel %vm1901_vm8, %v1897_v35, %v1905_v27  ;;  %v2410_v45 = vpop.f32.mrf.mxu0  ;;  %vm1900_vm5 = vcmp.ge.f32.partialorder %v1896_v39, 0.0 }
 0x5a4   :  { %v1994_v46 = vadd.f32 %v2410_v45, %v2118_v40  ;;  %v1881_v47 = vpop.f32.mrf.mxu1 }
 0x5a5   :  { %v1899_v48 = vadd.f32 %v2117_v31, %v1887_v38  ;;  %v1882_v49 = vadd.f32 %v1881_v47, %v1784_v36  ;;  %v1908_v43 = vsel %vm1900_vm5, %v1896_v39, %v1904_v42  ;;  %v1988_v50 = vpop.f32.mrf.mxu0 }
 0x5a6   :  { %v2008_v51 = vadd.f32 %v1994_v46, %v1909_v44  ;;  %v1989_v52 = vadd.f32 %v2118_v40, %v1988_v50  ;;  %v2413_v53 = vpop.f32.mrf.mxu1 }
 0x5a7   :  { %v1907_v54 = vmul.f32 0.01, %v1899_v48  ;;  %v1898_v55 = vadd.f32 %v2117_v31, %v1882_v49  ;;  %vm1903_vm9 = vcmp.ge.f32.partialorder %v1899_v48, 0.0  ;;  %v2004_v56 = vadd.f32 %v2413_v53, %v2118_v40 }
 0x5a8   :  { %vm2012_vm10 = vcmp.ge.f32.partialorder %v2008_v51, 0.0  ;;  %v2016_v57 = vmul.f32 0.01, %v2008_v51  ;;  %v2007_v58 = vadd.f32 %v1989_v52, %v1908_v43  ;;  %v1998_v59 = vpop.f32.mrf.mxu1 }
 0x5a9   :  { %v1906_v60 = vmul.f32 0.01, %v1898_v55  ;;  %v1911_v61 = vsel %vm1903_vm9, %v1899_v48, %v1907_v54  ;;  %vm1902_vm11 = vcmp.ge.f32.partialorder %v1898_v55, 0.0  ;;  %v1999_v62 = vadd.f32 %v2118_v40, %v1998_v59 }
 0x5aa   :  { %v2020_v63 = vsel %vm2012_vm10, %v2008_v51, %v2016_v57  ;;  %vm2011_vm12 = vcmp.ge.f32.partialorder %v2007_v58, 0.0  ;;  %v2015_v0 = vmul.f32 0.01, %v2007_v58  ;;  %v2010_v2 = vadd.f32 %v2004_v56, %v1911_v61 }
 0x5ab   :  { %2024 = vst.msk [vmem:[#allocation25 + $0x8] sm:$0xff] %vm1695_vm3, %v2020_v63  ;;  %v1910_v3 = vsel %vm1902_vm11, %v1898_v55, %v1906_v60 }
 0x5ac   :  { %v2019_v4 = vsel %vm2011_vm12, %v2007_v58, %v2015_v0  ;;  %vm2014_vm13 = vcmp.ge.f32.partialorder %v2010_v2, 0.0  ;;  %v2018_v5 = vmul.f32 0.01, %v2010_v2  ;;  %v2009_v6 = vadd.f32 %v1999_v62, %v1910_v3 }
 0x5ad   :  { %2023 = vst.msk [vmem:[#allocation25] sm:$0xff] %vm1695_vm3, %v2019_v4 }
 0x5ae   :  { %v2022_v7 = vsel %vm2014_vm13, %v2010_v2, %v2018_v5  ;;  %vm2013_vm14 = vcmp.ge.f32.partialorder %v2009_v6, 0.0  ;;  %v2017_v8 = vmul.f32 0.01, %v2009_v6 }
 0x5af   :  { %2026 = vst.msk [vmem:[#allocation25 + $0x18] sm:$0xff] %vm1695_vm3, %v2022_v7 }
 0x5b0   :  { %v2021_v9 = vsel %vm2013_vm14, %v2009_v6, %v2017_v8 }
 0x5b1   :  { %2025 = vst.msk [vmem:[#allocation25 + $0x10] sm:$0xff] %vm1695_vm3, %v2021_v9 }
 0x5b2   :  { %2730 = shalt.err (!%p2727_p4)
}
 0x5b3   :  { %2038 = dma.vmem_to_hbm [thread:$0]  %s2033_s29, 512, %s3319_s25, [#allocation4], %s2764_s1, %s2764_s1, %s2765_s8  }
 0x5b4   :  { %2755 = dma.done.wait [#allocation4], 512  }
 0x5b5   :  { %2756 = vsyncadd [#allocation4], 4294966784 }
 0x5b6   :  { %2042 = vsyncpa [#allocation3], 1 }
 0x5b7   :  { %2043 = vsyncpa [#allocation6], 1 }
 0x5b8   :  { %2044 = vsyncpa [#allocation9], 1 }
 0x5b9   :  { %2045 = vsyncpa [#allocation12], 1 }
 0x5ba   :  { %2046 = vsyncpa [#allocation15], 1 }
 0x5bb   :  { %2047 = vsyncpa [#allocation18], 1 }
 0x5bc   :  { %2048 = vsyncpa [#allocation21], 1 }
 0x5bd   :  { %2049 = vsyncpa [#allocation24], 1 }
 0x5be   :  { %2050 = vsyncpa [#allocation4], 1 }

</bundles_post_ra>
